<compile_context>
chip_gen: v7x
topology: tpu7x:2x2x1
jax: 0.10.0
libtpu: 0.0.40
codegen_flags: <defaults>
</compile_context>

<pallas_src>
import functools

import jax
import jax.numpy as jnp
from jax.experimental import pallas as pl
from jax.experimental.pallas import tpu as pltpu

NEG_SLOPE = 0.2                   # LeakyReLU(negative_slope=0.2) <-> 'lrelu'
EPS = 1e-5                        # BatchNorm2d eps
VMEM_BUDGET = 24 * 1024 * 1024    # conservative across v5e / v6e / v7x
MAX_UNROLLED_ROWS = 128           # cap on rows handled per grid step


def _round_up(x, m):
    return ((x + m - 1) // m) * m


def _cdiv(a, b):
    return (a + b - 1) // b


def _conv_bn_lrelu_kernel(w_ref, x_ref, shift_ref, o_ref, acc_ref, *,
                          taps, stride, wp, ow, th, lacc, n_row_tiles):
    """One grid step = one batch element x one tile of `th` output rows.

    w_ref:     (KH*KW, OCp, Cp)   BN-scaled per-tap weights   (grid-constant)
    x_ref:     (1, Cp, Lflat)     padded image, spatially flattened (per n)
    shift_ref: (OCp, 1)           conv bias + BN shift        (grid-constant)
    o_ref:     (1, OCp, th, OW)   output tile, NCHW-contiguous
    acc_ref:   (OCp, lacc)        f32 accumulator over padded-width columns

    acc column j corresponds to padded-width position
    j = row_in_tile * stride * wp + col * stride; only the OW valid columns
    per row are extracted for the store, so no (K, M) patch matrix is built.
    """
    base = 0 if n_row_tiles == 1 else pl.program_id(1) * (th * stride * wp)

    for t, (kh, kw) in enumerate(taps):
        off = base + kh * wp + kw
        slab = x_ref[0, :, pl.ds(off, lacc)]                       # (Cp, lacc)
        contrib = jnp.dot(w_ref[t], slab,
                          preferred_element_type=jnp.float32)      # (OCp, lacc)
        if t == 0:
            acc_ref[...] = contrib
        else:
            acc_ref[...] += contrib

    shift = shift_ref[...]                                          # (OCp, 1)
    for r in range(th):
        start = r * stride * wp
        if stride == 1:
            row = acc_ref[:, pl.ds(start, ow)]                      # (OCp, OW)
        else:
            # TODO(synk): strided-lane read path is not exercised by the demo.
            row = acc_ref[:, pl.ds(start, ow, stride)]
        y = row + shift
        o_ref[0, :, r, :] = jnp.where(y >= 0, y, NEG_SLOPE * y).astype(o_ref.dtype)


@functools.partial(jax.jit,
                   static_argnames=("stride", "padding", "compute_dtype"))
def conv_block_forward(x, weight, bias, gamma, beta, run_mean, run_var, *,
                       stride, padding, compute_dtype=jnp.float32):
    """x: (N,C,H,W) f32; weight: (OC,C,KH,KW); bias/gamma/beta/mean/var: (OC,)."""
    N, C, H, W = x.shape
    OC, _, KH, KW = weight.shape
    s, p = stride, padding
    OH = (H + 2 * p - KH) // s + 1
    OW = (W + 2 * p - KW) // s + 1
    Hp, Wp = H + 2 * p, W + 2 * p
    T = KH * KW

    cd = jnp.dtype(compute_dtype)
    sub = {4: 8, 2: 16, 1: 32}[cd.itemsize]          # sublane packing multiple
    Cp = _round_up(C, sub)
    OCp = _round_up(OC, 8)

    # ---- eval-mode BN folding + per-tap weight layout (tiny constants) ----
    scale = gamma / jnp.sqrt(run_var + EPS)                          # (OC,)
    shift = (bias - run_mean) * scale + beta                         # (OC,)
    w_taps = (weight * scale[:, None, None, None]).transpose(2, 3, 0, 1)
    w_taps = w_taps.reshape(T, OC, C)                                # t = kh*KW + kw
    w_p = jnp.pad(w_taps, ((0, 0), (0, OCp - OC), (0, Cp - C))).astype(cd)
    shift_p = jnp.pad(shift.astype(jnp.float32)[:, None], ((0, OCp - OC), (0, 0)))

    # ---- row tile from a VMEM byte budget (double-buffered blocks) ----
    in_bytes = 2 * Cp * _round_up(Hp * Wp + Wp, 128) * cd.itemsize
    w_bytes = 2 * T * OCp * Cp * cd.itemsize
    per_row = OCp * s * Wp * 4 + 2 * OCp * OW * 4          # acc + out tile rows
    th = max((VMEM_BUDGET - in_bytes - w_bytes) // max(per_row, 1), 8)
    th = min(th, OH, MAX_UNROLLED_ROWS)
    if th < OH:
        th = max((th // 8) * 8, 8)          # tiled row dim must be 8-aligned
    R = _cdiv(OH, th)
    if N * R < 2 and OH > 8:                # keep >=2 grid steps (v7x: 2 TCs)
        th = max(_round_up(_cdiv(OH, 2), 8), 8)
        R = _cdiv(OH, th)

    lacc = _round_up((th - 1) * s * Wp + (OW - 1) * s + 1, 128)
    max_off = (R - 1) * th * s * Wp + (KH - 1) * Wp + (KW - 1)
    lflat = _round_up(max(max_off + lacc, Hp * Wp), 128)

    # ---- input: zero-pad spatially (+ channel pad) and flatten (~1.3x copy) --
    xp = jnp.pad(x, ((0, 0), (0, Cp - C), (p, p), (p, p)))           # (N,Cp,Hp,Wp)
    x_flat = jnp.pad(xp.reshape(N, Cp, Hp * Wp),
                     ((0, 0), (0, 0), (0, lflat - Hp * Wp))).astype(cd)

    est_vmem = (w_bytes + 2 * Cp * lflat * cd.itemsize + 2 * OCp * 4
                + 2 * OCp * th * OW * 4 + OCp * lacc * 4)
    vmem_limit = int(min(48 * 1024 * 1024, max(32 * 1024 * 1024, 2 * est_vmem)))

    taps = tuple((kh, kw) for kh in range(KH) for kw in range(KW))
    kernel = functools.partial(
        _conv_bn_lrelu_kernel, taps=taps, stride=s, wp=Wp, ow=OW, th=th,
        lacc=lacc, n_row_tiles=R)

    out = pl.pallas_call(
        kernel,
        out_shape=jax.ShapeDtypeStruct((N, OCp, R * th, OW), jnp.float32),
        grid=(N, R),
        in_specs=[
            pl.BlockSpec((T, OCp, Cp), lambda n, r: (0, 0, 0)),      # weights
            pl.BlockSpec((1, Cp, lflat), lambda n, r: (n, 0, 0)),    # image (per n)
            pl.BlockSpec((OCp, 1), lambda n, r: (0, 0)),             # shift
        ],
        out_specs=pl.BlockSpec((1, OCp, th, OW), lambda n, r: (n, 0, r, 0)),
        scratch_shapes=[pltpu.VMEM((OCp, lacc), jnp.float32)],
        compiler_params=pltpu.CompilerParams(
            dimension_semantics=("parallel", "arbitrary"),
            vmem_limit_bytes=vmem_limit),
    )(w_p, x_flat, shift_p)

    # Output is already NCHW-contiguous; this slice is a no-op when OC and OH
    # required no padding (true for the demo shape).
    return out[:, :OC, :OH, :]


def _reference(x, weight, bias, gamma, beta, run_mean, run_var, stride, padding):
    y = jax.lax.conv_general_dilated(
        x, weight, (stride, stride), [(padding, padding), (padding, padding)],
        dimension_numbers=("NCHW", "OIHW", "NCHW"))
    y = y + bias[None, :, None, None]
    y = (y - run_mean[None, :, None, None]) / jnp.sqrt(
        run_var[None, :, None, None] + EPS)
    y = y * gamma[None, :, None, None] + beta[None, :, None, None]
    return jnp.where(y >= 0, y, NEG_SLOPE * y)


if __name__ == "__main__":
    # ConvolutionalBlock(4, 8, kernel_size=3, stride=1, padding=1,
    #                    activation='lrelu', batch_norm=True, transpose=False)
    N, C, H, W = 2, 4, 16, 16
    OC, KH, KW = 8, 3, 3
    stride, padding = 1, 1

    key = jax.random.PRNGKey(0)
    kx, kw, kb, kg, kbe, km, kv = jax.random.split(key, 7)
    x = jax.random.normal(kx, (N, C, H, W), jnp.float32)
    weight = 0.1 * jax.random.normal(kw, (OC, C, KH, KW), jnp.float32)
    bias = 0.1 * jax.random.normal(kb, (OC,), jnp.float32)
    gamma = 1.0 + 0.1 * jax.random.normal(kg, (OC,), jnp.float32)
    beta = 0.1 * jax.random.normal(kbe, (OC,), jnp.float32)
    run_mean = 0.1 * jax.random.normal(km, (OC,), jnp.float32)
    run_var = jnp.abs(1.0 + 0.1 * jax.random.normal(kv, (OC,), jnp.float32))

    out = conv_block_forward(x, weight, bias, gamma, beta, run_mean, run_var,
                             stride=stride, padding=padding)
    out = jax.block_until_ready(out)

    ref = _reference(x, weight, bias, gamma, beta, run_mean, run_var,
                     stride, padding)
    assert out.shape == (N, OC, H, W), out.shape
    assert jnp.allclose(out, ref, atol=1e-4, rtol=1e-4), \
        float(jnp.max(jnp.abs(out - ref)))
    print("KERNEL_OK")
</pallas_src>

<mosaic_0001>
module attributes {stable_mosaic.version = 11 : i64} {
  func.func @_conv_bn_lrelu_kernel(%arg0: i32, %arg1: i32, %arg2: memref<9x8x8xf32, #tpu.memory_space<vmem>>, %arg3: memref<1x8x512xf32, #tpu.memory_space<vmem>>, %arg4: memref<8x1xf32, #tpu.memory_space<vmem>>, %arg5: memref<1x8x16x16xf32, #tpu.memory_space<vmem>>, %arg6: memref<8x384xf32, #tpu.memory_space<vmem>>) attributes {dimension_semantics = [#tpu.dimension_semantics<parallel>, #tpu.dimension_semantics<arbitrary>], iteration_bounds = array<i64: 2, 1>, scalar_prefetch = 0 : i64, scratch_operands = 1 : i64, tpu.core_type = #tpu.core_type<tc>, window_params = [{pipeline_mode = #tpu.pipeline_mode<synchronous>, transform_indices = @transform_0, window_bounds = array<i64: 9, 8, 8>}, {transform_indices = @transform_1, window_bounds = array<i64: 1, 8, 512>}, {pipeline_mode = #tpu.pipeline_mode<synchronous>, transform_indices = @transform_2, window_bounds = array<i64: 8, 1>}, {transform_indices = @transform_3, window_bounds = array<i64: 1, 8, 16, 16>}]} {
    %c0 = arith.constant 0 : index
    %c0_0 = arith.constant 0 : index
    %c0_1 = arith.constant 0 : index
    %0 = vector.load %arg3[%c0, %c0_0, %c0_1] : memref<1x8x512xf32, #tpu.memory_space<vmem>>, vector<1x8x384xf32>
    %1 = vector.shape_cast %0 : vector<1x8x384xf32> to vector<8x384xf32>
    %c0_2 = arith.constant 0 : index
    %c0_3 = arith.constant 0 : index
    %c0_4 = arith.constant 0 : index
    %2 = vector.load %arg2[%c0_2, %c0_3, %c0_4] : memref<9x8x8xf32, #tpu.memory_space<vmem>>, vector<1x8x8xf32>
    %3 = vector.shape_cast %2 : vector<1x8x8xf32> to vector<8x8xf32>
    %cst = arith.constant dense<0.000000e+00> : vector<8x384xf32>
    %4 = tpu.matmul %3, %1, %cst {dimension_numbers = #tpu.dot_dimension_numbers<[1], [0], [0], [1], [0, 0, 1, 1], [], []>} : vector<8x8xf32>, vector<8x384xf32>, vector<8x384xf32> -> vector<8x384xf32>
    %c0_5 = arith.constant 0 : index
    %c0_6 = arith.constant 0 : index
    %5 = vector.load %arg6[%c0_5, %c0_6] : memref<8x384xf32, #tpu.memory_space<vmem>>, vector<8x384xf32>
    tpu.vector_store %arg6[%c0_5, %c0_6], %4 {strides = array<i32>} : memref<8x384xf32, #tpu.memory_space<vmem>>, vector<8x384xf32>,
    %c0_7 = arith.constant 0 : index
    %c0_8 = arith.constant 0 : index
    %c1 = arith.constant 1 : index
    %6 = vector.load %arg3[%c0_7, %c0_8, %c1] : memref<1x8x512xf32, #tpu.memory_space<vmem>>, vector<1x8x384xf32>
    %7 = vector.shape_cast %6 : vector<1x8x384xf32> to vector<8x384xf32>
    %c1_9 = arith.constant 1 : index
    %c0_10 = arith.constant 0 : index
    %c0_11 = arith.constant 0 : index
    %8 = vector.load %arg2[%c1_9, %c0_10, %c0_11] : memref<9x8x8xf32, #tpu.memory_space<vmem>>, vector<1x8x8xf32>
    %9 = vector.shape_cast %8 : vector<1x8x8xf32> to vector<8x8xf32>
    %cst_12 = arith.constant dense<0.000000e+00> : vector<8x384xf32>
    %10 = tpu.matmul %9, %7, %cst_12 {dimension_numbers = #tpu.dot_dimension_numbers<[1], [0], [0], [1], [0, 0, 1, 1], [], []>} : vector<8x8xf32>, vector<8x384xf32>, vector<8x384xf32> -> vector<8x384xf32>
    %c0_13 = arith.constant 0 : index
    %c0_14 = arith.constant 0 : index
    %11 = vector.load %arg6[%c0_13, %c0_14] : memref<8x384xf32, #tpu.memory_space<vmem>>, vector<8x384xf32>
    %12 = arith.addf %11, %10 : vector<8x384xf32>
    %c0_15 = arith.constant 0 : index
    %c0_16 = arith.constant 0 : index
    %13 = vector.load %arg6[%c0_15, %c0_16] : memref<8x384xf32, #tpu.memory_space<vmem>>, vector<8x384xf32>
    tpu.vector_store %arg6[%c0_15, %c0_16], %12 {strides = array<i32>} : memref<8x384xf32, #tpu.memory_space<vmem>>, vector<8x384xf32>,
    %c0_17 = arith.constant 0 : index
    %c0_18 = arith.constant 0 : index
    %c2 = arith.constant 2 : index
    %14 = vector.load %arg3[%c0_17, %c0_18, %c2] : memref<1x8x512xf32, #tpu.memory_space<vmem>>, vector<1x8x384xf32>
    %15 = vector.shape_cast %14 : vector<1x8x384xf32> to vector<8x384xf32>
    %c2_19 = arith.constant 2 : index
    %c0_20 = arith.constant 0 : index
    %c0_21 = arith.constant 0 : index
    %16 = vector.load %arg2[%c2_19, %c0_20, %c0_21] : memref<9x8x8xf32, #tpu.memory_space<vmem>>, vector<1x8x8xf32>
    %17 = vector.shape_cast %16 : vector<1x8x8xf32> to vector<8x8xf32>
    %cst_22 = arith.constant dense<0.000000e+00> : vector<8x384xf32>
    %18 = tpu.matmul %17, %15, %cst_22 {dimension_numbers = #tpu.dot_dimension_numbers<[1], [0], [0], [1], [0, 0, 1, 1], [], []>} : vector<8x8xf32>, vector<8x384xf32>, vector<8x384xf32> -> vector<8x384xf32>
    %c0_23 = arith.constant 0 : index
    %c0_24 = arith.constant 0 : index
    %19 = vector.load %arg6[%c0_23, %c0_24] : memref<8x384xf32, #tpu.memory_space<vmem>>, vector<8x384xf32>
    %20 = arith.addf %19, %18 : vector<8x384xf32>
    %c0_25 = arith.constant 0 : index
    %c0_26 = arith.constant 0 : index
    %21 = vector.load %arg6[%c0_25, %c0_26] : memref<8x384xf32, #tpu.memory_space<vmem>>, vector<8x384xf32>
    tpu.vector_store %arg6[%c0_25, %c0_26], %20 {strides = array<i32>} : memref<8x384xf32, #tpu.memory_space<vmem>>, vector<8x384xf32>,
    %c0_27 = arith.constant 0 : index
    %c0_28 = arith.constant 0 : index
    %c18 = arith.constant 18 : index
    %22 = vector.load %arg3[%c0_27, %c0_28, %c18] : memref<1x8x512xf32, #tpu.memory_space<vmem>>, vector<1x8x384xf32>
    %23 = vector.shape_cast %22 : vector<1x8x384xf32> to vector<8x384xf32>
    %c3 = arith.constant 3 : index
    %c0_29 = arith.constant 0 : index
    %c0_30 = arith.constant 0 : index
    %24 = vector.load %arg2[%c3, %c0_29, %c0_30] : memref<9x8x8xf32, #tpu.memory_space<vmem>>, vector<1x8x8xf32>
    %25 = vector.shape_cast %24 : vector<1x8x8xf32> to vector<8x8xf32>
    %cst_31 = arith.constant dense<0.000000e+00> : vector<8x384xf32>
    %26 = tpu.matmul %25, %23, %cst_31 {dimension_numbers = #tpu.dot_dimension_numbers<[1], [0], [0], [1], [0, 0, 1, 1], [], []>} : vector<8x8xf32>, vector<8x384xf32>, vector<8x384xf32> -> vector<8x384xf32>
    %c0_32 = arith.constant 0 : index
    %c0_33 = arith.constant 0 : index
    %27 = vector.load %arg6[%c0_32, %c0_33] : memref<8x384xf32, #tpu.memory_space<vmem>>, vector<8x384xf32>
    %28 = arith.addf %27, %26 : vector<8x384xf32>
    %c0_34 = arith.constant 0 : index
    %c0_35 = arith.constant 0 : index
    %29 = vector.load %arg6[%c0_34, %c0_35] : memref<8x384xf32, #tpu.memory_space<vmem>>, vector<8x384xf32>
    tpu.vector_store %arg6[%c0_34, %c0_35], %28 {strides = array<i32>} : memref<8x384xf32, #tpu.memory_space<vmem>>, vector<8x384xf32>,
    %c0_36 = arith.constant 0 : index
    %c0_37 = arith.constant 0 : index
    %c19 = arith.constant 19 : index
    %30 = vector.load %arg3[%c0_36, %c0_37, %c19] : memref<1x8x512xf32, #tpu.memory_space<vmem>>, vector<1x8x384xf32>
    %31 = vector.shape_cast %30 : vector<1x8x384xf32> to vector<8x384xf32>
    %c4 = arith.constant 4 : index
    %c0_38 = arith.constant 0 : index
    %c0_39 = arith.constant 0 : index
    %32 = vector.load %arg2[%c4, %c0_38, %c0_39] : memref<9x8x8xf32, #tpu.memory_space<vmem>>, vector<1x8x8xf32>
    %33 = vector.shape_cast %32 : vector<1x8x8xf32> to vector<8x8xf32>
    %cst_40 = arith.constant dense<0.000000e+00> : vector<8x384xf32>
    %34 = tpu.matmul %33, %31, %cst_40 {dimension_numbers = #tpu.dot_dimension_numbers<[1], [0], [0], [1], [0, 0, 1, 1], [], []>} : vector<8x8xf32>, vector<8x384xf32>, vector<8x384xf32> -> vector<8x384xf32>
    %c0_41 = arith.constant 0 : index
    %c0_42 = arith.constant 0 : index
    %35 = vector.load %arg6[%c0_41, %c0_42] : memref<8x384xf32, #tpu.memory_space<vmem>>, vector<8x384xf32>
    %36 = arith.addf %35, %34 : vector<8x384xf32>
    %c0_43 = arith.constant 0 : index
    %c0_44 = arith.constant 0 : index
    %37 = vector.load %arg6[%c0_43, %c0_44] : memref<8x384xf32, #tpu.memory_space<vmem>>, vector<8x384xf32>
    tpu.vector_store %arg6[%c0_43, %c0_44], %36 {strides = array<i32>} : memref<8x384xf32, #tpu.memory_space<vmem>>, vector<8x384xf32>,
    %c0_45 = arith.constant 0 : index
    %c0_46 = arith.constant 0 : index
    %c20 = arith.constant 20 : index
    %38 = vector.load %arg3[%c0_45, %c0_46, %c20] : memref<1x8x512xf32, #tpu.memory_space<vmem>>, vector<1x8x384xf32>
    %39 = vector.shape_cast %38 : vector<1x8x384xf32> to vector<8x384xf32>
    %c5 = arith.constant 5 : index
    %c0_47 = arith.constant 0 : index
    %c0_48 = arith.constant 0 : index
    %40 = vector.load %arg2[%c5, %c0_47, %c0_48] : memref<9x8x8xf32, #tpu.memory_space<vmem>>, vector<1x8x8xf32>
    %41 = vector.shape_cast %40 : vector<1x8x8xf32> to vector<8x8xf32>
    %cst_49 = arith.constant dense<0.000000e+00> : vector<8x384xf32>
    %42 = tpu.matmul %41, %39, %cst_49 {dimension_numbers = #tpu.dot_dimension_numbers<[1], [0], [0], [1], [0, 0, 1, 1], [], []>} : vector<8x8xf32>, vector<8x384xf32>, vector<8x384xf32> -> vector<8x384xf32>
    %c0_50 = arith.constant 0 : index
    %c0_51 = arith.constant 0 : index
    %43 = vector.load %arg6[%c0_50, %c0_51] : memref<8x384xf32, #tpu.memory_space<vmem>>, vector<8x384xf32>
    %44 = arith.addf %43, %42 : vector<8x384xf32>
    %c0_52 = arith.constant 0 : index
    %c0_53 = arith.constant 0 : index
    %45 = vector.load %arg6[%c0_52, %c0_53] : memref<8x384xf32, #tpu.memory_space<vmem>>, vector<8x384xf32>
    tpu.vector_store %arg6[%c0_52, %c0_53], %44 {strides = array<i32>} : memref<8x384xf32, #tpu.memory_space<vmem>>, vector<8x384xf32>,
    %c0_54 = arith.constant 0 : index
    %c0_55 = arith.constant 0 : index
    %c36 = arith.constant 36 : index
    %46 = vector.load %arg3[%c0_54, %c0_55, %c36] : memref<1x8x512xf32, #tpu.memory_space<vmem>>, vector<1x8x384xf32>
    %47 = vector.shape_cast %46 : vector<1x8x384xf32> to vector<8x384xf32>
    %c6 = arith.constant 6 : index
    %c0_56 = arith.constant 0 : index
    %c0_57 = arith.constant 0 : index
    %48 = vector.load %arg2[%c6, %c0_56, %c0_57] : memref<9x8x8xf32, #tpu.memory_space<vmem>>, vector<1x8x8xf32>
    %49 = vector.shape_cast %48 : vector<1x8x8xf32> to vector<8x8xf32>
    %cst_58 = arith.constant dense<0.000000e+00> : vector<8x384xf32>
    %50 = tpu.matmul %49, %47, %cst_58 {dimension_numbers = #tpu.dot_dimension_numbers<[1], [0], [0], [1], [0, 0, 1, 1], [], []>} : vector<8x8xf32>, vector<8x384xf32>, vector<8x384xf32> -> vector<8x384xf32>
    %c0_59 = arith.constant 0 : index
    %c0_60 = arith.constant 0 : index
    %51 = vector.load %arg6[%c0_59, %c0_60] : memref<8x384xf32, #tpu.memory_space<vmem>>, vector<8x384xf32>
    %52 = arith.addf %51, %50 : vector<8x384xf32>
    %c0_61 = arith.constant 0 : index
    %c0_62 = arith.constant 0 : index
    %53 = vector.load %arg6[%c0_61, %c0_62] : memref<8x384xf32, #tpu.memory_space<vmem>>, vector<8x384xf32>
    tpu.vector_store %arg6[%c0_61, %c0_62], %52 {strides = array<i32>} : memref<8x384xf32, #tpu.memory_space<vmem>>, vector<8x384xf32>,
    %c0_63 = arith.constant 0 : index
    %c0_64 = arith.constant 0 : index
    %c37 = arith.constant 37 : index
    %54 = vector.load %arg3[%c0_63, %c0_64, %c37] : memref<1x8x512xf32, #tpu.memory_space<vmem>>, vector<1x8x384xf32>
    %55 = vector.shape_cast %54 : vector<1x8x384xf32> to vector<8x384xf32>
    %c7 = arith.constant 7 : index
    %c0_65 = arith.constant 0 : index
    %c0_66 = arith.constant 0 : index
    %56 = vector.load %arg2[%c7, %c0_65, %c0_66] : memref<9x8x8xf32, #tpu.memory_space<vmem>>, vector<1x8x8xf32>
    %57 = vector.shape_cast %56 : vector<1x8x8xf32> to vector<8x8xf32>
    %cst_67 = arith.constant dense<0.000000e+00> : vector<8x384xf32>
    %58 = tpu.matmul %57, %55, %cst_67 {dimension_numbers = #tpu.dot_dimension_numbers<[1], [0], [0], [1], [0, 0, 1, 1], [], []>} : vector<8x8xf32>, vector<8x384xf32>, vector<8x384xf32> -> vector<8x384xf32>
    %c0_68 = arith.constant 0 : index
    %c0_69 = arith.constant 0 : index
    %59 = vector.load %arg6[%c0_68, %c0_69] : memref<8x384xf32, #tpu.memory_space<vmem>>, vector<8x384xf32>
    %60 = arith.addf %59, %58 : vector<8x384xf32>
    %c0_70 = arith.constant 0 : index
    %c0_71 = arith.constant 0 : index
    %61 = vector.load %arg6[%c0_70, %c0_71] : memref<8x384xf32, #tpu.memory_space<vmem>>, vector<8x384xf32>
    tpu.vector_store %arg6[%c0_70, %c0_71], %60 {strides = array<i32>} : memref<8x384xf32, #tpu.memory_space<vmem>>, vector<8x384xf32>,
    %c0_72 = arith.constant 0 : index
    %c0_73 = arith.constant 0 : index
    %c38 = arith.constant 38 : index
    %62 = vector.load %arg3[%c0_72, %c0_73, %c38] : memref<1x8x512xf32, #tpu.memory_space<vmem>>, vector<1x8x384xf32>
    %63 = vector.shape_cast %62 : vector<1x8x384xf32> to vector<8x384xf32>
    %c8 = arith.constant 8 : index
    %c0_74 = arith.constant 0 : index
    %c0_75 = arith.constant 0 : index
    %64 = vector.load %arg2[%c8, %c0_74, %c0_75] : memref<9x8x8xf32, #tpu.memory_space<vmem>>, vector<1x8x8xf32>
    %65 = vector.shape_cast %64 : vector<1x8x8xf32> to vector<8x8xf32>
    %cst_76 = arith.constant dense<0.000000e+00> : vector<8x384xf32>
    %66 = tpu.matmul %65, %63, %cst_76 {dimension_numbers = #tpu.dot_dimension_numbers<[1], [0], [0], [1], [0, 0, 1, 1], [], []>} : vector<8x8xf32>, vector<8x384xf32>, vector<8x384xf32> -> vector<8x384xf32>
    %c0_77 = arith.constant 0 : index
    %c0_78 = arith.constant 0 : index
    %67 = vector.load %arg6[%c0_77, %c0_78] : memref<8x384xf32, #tpu.memory_space<vmem>>, vector<8x384xf32>
    %68 = arith.addf %67, %66 : vector<8x384xf32>
    %c0_79 = arith.constant 0 : index
    %c0_80 = arith.constant 0 : index
    %69 = vector.load %arg6[%c0_79, %c0_80] : memref<8x384xf32, #tpu.memory_space<vmem>>, vector<8x384xf32>
    tpu.vector_store %arg6[%c0_79, %c0_80], %68 {strides = array<i32>} : memref<8x384xf32, #tpu.memory_space<vmem>>, vector<8x384xf32>,
    %c0_81 = arith.constant 0 : index
    %c0_82 = arith.constant 0 : index
    %70 = vector.load %arg4[%c0_81, %c0_82] : memref<8x1xf32, #tpu.memory_space<vmem>>, vector<8x1xf32>
    %c0_83 = arith.constant 0 : index
    %c0_84 = arith.constant 0 : index
    %71 = vector.load %arg6[%c0_83, %c0_84] : memref<8x384xf32, #tpu.memory_space<vmem>>, vector<8x16xf32>
    %72 = vector.broadcast %70 : vector<8x1xf32> to vector<8x16xf32>
    %73 = arith.addf %71, %72 : vector<8x16xf32>
    %cst_85 = arith.constant 0.000000e+00 : f32
    %74 = vector.broadcast %cst_85 : f32 to vector<8x16xf32>
    %75 = arith.cmpf oge, %73, %74 : vector<8x16xf32>
    %cst_86 = arith.constant 2.000000e-01 : f32
    %76 = vector.broadcast %cst_86 : f32 to vector<8x16xf32>
    %77 = arith.mulf %76, %73 : vector<8x16xf32>
    %78 = arith.select %75, %73, %77 : vector<8x16xi1>, vector<8x16xf32>
    %c0_87 = arith.constant 0 : index
    %c0_88 = arith.constant 0 : index
    %c0_89 = arith.constant 0 : index
    %c0_90 = arith.constant 0 : index
    %79 = vector.load %arg5[%c0_87, %c0_88, %c0_89, %c0_90] : memref<1x8x16x16xf32, #tpu.memory_space<vmem>>, vector<1x8x1x16xf32>
    %80 = vector.shape_cast %79 : vector<1x8x1x16xf32> to vector<8x16xf32>
    %81 = vector.shape_cast %78 : vector<8x16xf32> to vector<1x8x1x16xf32>
    tpu.vector_store %arg5[%c0_87, %c0_88, %c0_89, %c0_90], %81 {strides = array<i32>} : memref<1x8x16x16xf32, #tpu.memory_space<vmem>>, vector<1x8x1x16xf32>,
    %c0_91 = arith.constant 0 : index
    %c18_92 = arith.constant 18 : index
    %82 = vector.load %arg6[%c0_91, %c18_92] : memref<8x384xf32, #tpu.memory_space<vmem>>, vector<8x16xf32>
    %83 = vector.broadcast %70 : vector<8x1xf32> to vector<8x16xf32>
    %84 = arith.addf %82, %83 : vector<8x16xf32>
    %cst_93 = arith.constant 0.000000e+00 : f32
    %85 = vector.broadcast %cst_93 : f32 to vector<8x16xf32>
    %86 = arith.cmpf oge, %84, %85 : vector<8x16xf32>
    %cst_94 = arith.constant 2.000000e-01 : f32
    %87 = vector.broadcast %cst_94 : f32 to vector<8x16xf32>
    %88 = arith.mulf %87, %84 : vector<8x16xf32>
    %89 = arith.select %86, %84, %88 : vector<8x16xi1>, vector<8x16xf32>
    %c0_95 = arith.constant 0 : index
    %c0_96 = arith.constant 0 : index
    %c1_97 = arith.constant 1 : index
    %c0_98 = arith.constant 0 : index
    %90 = vector.load %arg5[%c0_95, %c0_96, %c1_97, %c0_98] : memref<1x8x16x16xf32, #tpu.memory_space<vmem>>, vector<1x8x1x16xf32>
    %91 = vector.shape_cast %90 : vector<1x8x1x16xf32> to vector<8x16xf32>
    %92 = vector.shape_cast %89 : vector<8x16xf32> to vector<1x8x1x16xf32>
    tpu.vector_store %arg5[%c0_95, %c0_96, %c1_97, %c0_98], %92 {strides = array<i32>} : memref<1x8x16x16xf32, #tpu.memory_space<vmem>>, vector<1x8x1x16xf32>,
    %c0_99 = arith.constant 0 : index
    %c36_100 = arith.constant 36 : index
    %93 = vector.load %arg6[%c0_99, %c36_100] : memref<8x384xf32, #tpu.memory_space<vmem>>, vector<8x16xf32>
    %94 = vector.broadcast %70 : vector<8x1xf32> to vector<8x16xf32>
    %95 = arith.addf %93, %94 : vector<8x16xf32>
    %cst_101 = arith.constant 0.000000e+00 : f32
    %96 = vector.broadcast %cst_101 : f32 to vector<8x16xf32>
    %97 = arith.cmpf oge, %95, %96 : vector<8x16xf32>
    %cst_102 = arith.constant 2.000000e-01 : f32
    %98 = vector.broadcast %cst_102 : f32 to vector<8x16xf32>
    %99 = arith.mulf %98, %95 : vector<8x16xf32>
    %100 = arith.select %97, %95, %99 : vector<8x16xi1>, vector<8x16xf32>
    %c0_103 = arith.constant 0 : index
    %c0_104 = arith.constant 0 : index
    %c2_105 = arith.constant 2 : index
    %c0_106 = arith.constant 0 : index
    %101 = vector.load %arg5[%c0_103, %c0_104, %c2_105, %c0_106] : memref<1x8x16x16xf32, #tpu.memory_space<vmem>>, vector<1x8x1x16xf32>
    %102 = vector.shape_cast %101 : vector<1x8x1x16xf32> to vector<8x16xf32>
    %103 = vector.shape_cast %100 : vector<8x16xf32> to vector<1x8x1x16xf32>
    tpu.vector_store %arg5[%c0_103, %c0_104, %c2_105, %c0_106], %103 {strides = array<i32>} : memref<1x8x16x16xf32, #tpu.memory_space<vmem>>, vector<1x8x1x16xf32>,
    %c0_107 = arith.constant 0 : index
    %c54 = arith.constant 54 : index
    %104 = vector.load %arg6[%c0_107, %c54] : memref<8x384xf32, #tpu.memory_space<vmem>>, vector<8x16xf32>
    %105 = vector.broadcast %70 : vector<8x1xf32> to vector<8x16xf32>
    %106 = arith.addf %104, %105 : vector<8x16xf32>
    %cst_108 = arith.constant 0.000000e+00 : f32
    %107 = vector.broadcast %cst_108 : f32 to vector<8x16xf32>
    %108 = arith.cmpf oge, %106, %107 : vector<8x16xf32>
    %cst_109 = arith.constant 2.000000e-01 : f32
    %109 = vector.broadcast %cst_109 : f32 to vector<8x16xf32>
    %110 = arith.mulf %109, %106 : vector<8x16xf32>
    %111 = arith.select %108, %106, %110 : vector<8x16xi1>, vector<8x16xf32>
    %c0_110 = arith.constant 0 : index
    %c0_111 = arith.constant 0 : index
    %c3_112 = arith.constant 3 : index
    %c0_113 = arith.constant 0 : index
    %112 = vector.load %arg5[%c0_110, %c0_111, %c3_112, %c0_113] : memref<1x8x16x16xf32, #tpu.memory_space<vmem>>, vector<1x8x1x16xf32>
    %113 = vector.shape_cast %112 : vector<1x8x1x16xf32> to vector<8x16xf32>
    %114 = vector.shape_cast %111 : vector<8x16xf32> to vector<1x8x1x16xf32>
    tpu.vector_store %arg5[%c0_110, %c0_111, %c3_112, %c0_113], %114 {strides = array<i32>} : memref<1x8x16x16xf32, #tpu.memory_space<vmem>>, vector<1x8x1x16xf32>,
    %c0_114 = arith.constant 0 : index
    %c72 = arith.constant 72 : index
    %115 = vector.load %arg6[%c0_114, %c72] : memref<8x384xf32, #tpu.memory_space<vmem>>, vector<8x16xf32>
    %116 = vector.broadcast %70 : vector<8x1xf32> to vector<8x16xf32>
    %117 = arith.addf %115, %116 : vector<8x16xf32>
    %cst_115 = arith.constant 0.000000e+00 : f32
    %118 = vector.broadcast %cst_115 : f32 to vector<8x16xf32>
    %119 = arith.cmpf oge, %117, %118 : vector<8x16xf32>
    %cst_116 = arith.constant 2.000000e-01 : f32
    %120 = vector.broadcast %cst_116 : f32 to vector<8x16xf32>
    %121 = arith.mulf %120, %117 : vector<8x16xf32>
    %122 = arith.select %119, %117, %121 : vector<8x16xi1>, vector<8x16xf32>
    %c0_117 = arith.constant 0 : index
    %c0_118 = arith.constant 0 : index
    %c4_119 = arith.constant 4 : index
    %c0_120 = arith.constant 0 : index
    %123 = vector.load %arg5[%c0_117, %c0_118, %c4_119, %c0_120] : memref<1x8x16x16xf32, #tpu.memory_space<vmem>>, vector<1x8x1x16xf32>
    %124 = vector.shape_cast %123 : vector<1x8x1x16xf32> to vector<8x16xf32>
    %125 = vector.shape_cast %122 : vector<8x16xf32> to vector<1x8x1x16xf32>
    tpu.vector_store %arg5[%c0_117, %c0_118, %c4_119, %c0_120], %125 {strides = array<i32>} : memref<1x8x16x16xf32, #tpu.memory_space<vmem>>, vector<1x8x1x16xf32>,
    %c0_121 = arith.constant 0 : index
    %c90 = arith.constant 90 : index
    %126 = vector.load %arg6[%c0_121, %c90] : memref<8x384xf32, #tpu.memory_space<vmem>>, vector<8x16xf32>
    %127 = vector.broadcast %70 : vector<8x1xf32> to vector<8x16xf32>
    %128 = arith.addf %126, %127 : vector<8x16xf32>
    %cst_122 = arith.constant 0.000000e+00 : f32
    %129 = vector.broadcast %cst_122 : f32 to vector<8x16xf32>
    %130 = arith.cmpf oge, %128, %129 : vector<8x16xf32>
    %cst_123 = arith.constant 2.000000e-01 : f32
    %131 = vector.broadcast %cst_123 : f32 to vector<8x16xf32>
    %132 = arith.mulf %131, %128 : vector<8x16xf32>
    %133 = arith.select %130, %128, %132 : vector<8x16xi1>, vector<8x16xf32>
    %c0_124 = arith.constant 0 : index
    %c0_125 = arith.constant 0 : index
    %c5_126 = arith.constant 5 : index
    %c0_127 = arith.constant 0 : index
    %134 = vector.load %arg5[%c0_124, %c0_125, %c5_126, %c0_127] : memref<1x8x16x16xf32, #tpu.memory_space<vmem>>, vector<1x8x1x16xf32>
    %135 = vector.shape_cast %134 : vector<1x8x1x16xf32> to vector<8x16xf32>
    %136 = vector.shape_cast %133 : vector<8x16xf32> to vector<1x8x1x16xf32>
    tpu.vector_store %arg5[%c0_124, %c0_125, %c5_126, %c0_127], %136 {strides = array<i32>} : memref<1x8x16x16xf32, #tpu.memory_space<vmem>>, vector<1x8x1x16xf32>,
    %c0_128 = arith.constant 0 : index
    %c108 = arith.constant 108 : index
    %137 = vector.load %arg6[%c0_128, %c108] : memref<8x384xf32, #tpu.memory_space<vmem>>, vector<8x16xf32>
    %138 = vector.broadcast %70 : vector<8x1xf32> to vector<8x16xf32>
    %139 = arith.addf %137, %138 : vector<8x16xf32>
    %cst_129 = arith.constant 0.000000e+00 : f32
    %140 = vector.broadcast %cst_129 : f32 to vector<8x16xf32>
    %141 = arith.cmpf oge, %139, %140 : vector<8x16xf32>
    %cst_130 = arith.constant 2.000000e-01 : f32
    %142 = vector.broadcast %cst_130 : f32 to vector<8x16xf32>
    %143 = arith.mulf %142, %139 : vector<8x16xf32>
    %144 = arith.select %141, %139, %143 : vector<8x16xi1>, vector<8x16xf32>
    %c0_131 = arith.constant 0 : index
    %c0_132 = arith.constant 0 : index
    %c6_133 = arith.constant 6 : index
    %c0_134 = arith.constant 0 : index
    %145 = vector.load %arg5[%c0_131, %c0_132, %c6_133, %c0_134] : memref<1x8x16x16xf32, #tpu.memory_space<vmem>>, vector<1x8x1x16xf32>
    %146 = vector.shape_cast %145 : vector<1x8x1x16xf32> to vector<8x16xf32>
    %147 = vector.shape_cast %144 : vector<8x16xf32> to vector<1x8x1x16xf32>
    tpu.vector_store %arg5[%c0_131, %c0_132, %c6_133, %c0_134], %147 {strides = array<i32>} : memref<1x8x16x16xf32, #tpu.memory_space<vmem>>, vector<1x8x1x16xf32>,
    %c0_135 = arith.constant 0 : index
    %c126 = arith.constant 126 : index
    %148 = vector.load %arg6[%c0_135, %c126] : memref<8x384xf32, #tpu.memory_space<vmem>>, vector<8x16xf32>
    %149 = vector.broadcast %70 : vector<8x1xf32> to vector<8x16xf32>
    %150 = arith.addf %148, %149 : vector<8x16xf32>
    %cst_136 = arith.constant 0.000000e+00 : f32
    %151 = vector.broadcast %cst_136 : f32 to vector<8x16xf32>
    %152 = arith.cmpf oge, %150, %151 : vector<8x16xf32>
    %cst_137 = arith.constant 2.000000e-01 : f32
    %153 = vector.broadcast %cst_137 : f32 to vector<8x16xf32>
    %154 = arith.mulf %153, %150 : vector<8x16xf32>
    %155 = arith.select %152, %150, %154 : vector<8x16xi1>, vector<8x16xf32>
    %c0_138 = arith.constant 0 : index
    %c0_139 = arith.constant 0 : index
    %c7_140 = arith.constant 7 : index
    %c0_141 = arith.constant 0 : index
    %156 = vector.load %arg5[%c0_138, %c0_139, %c7_140, %c0_141] : memref<1x8x16x16xf32, #tpu.memory_space<vmem>>, vector<1x8x1x16xf32>
    %157 = vector.shape_cast %156 : vector<1x8x1x16xf32> to vector<8x16xf32>
    %158 = vector.shape_cast %155 : vector<8x16xf32> to vector<1x8x1x16xf32>
    tpu.vector_store %arg5[%c0_138, %c0_139, %c7_140, %c0_141], %158 {strides = array<i32>} : memref<1x8x16x16xf32, #tpu.memory_space<vmem>>, vector<1x8x1x16xf32>,
    %c0_142 = arith.constant 0 : index
    %c144 = arith.constant 144 : index
    %159 = vector.load %arg6[%c0_142, %c144] : memref<8x384xf32, #tpu.memory_space<vmem>>, vector<8x16xf32>
    %160 = vector.broadcast %70 : vector<8x1xf32> to vector<8x16xf32>
    %161 = arith.addf %159, %160 : vector<8x16xf32>
    %cst_143 = arith.constant 0.000000e+00 : f32
    %162 = vector.broadcast %cst_143 : f32 to vector<8x16xf32>
    %163 = arith.cmpf oge, %161, %162 : vector<8x16xf32>
    %cst_144 = arith.constant 2.000000e-01 : f32
    %164 = vector.broadcast %cst_144 : f32 to vector<8x16xf32>
    %165 = arith.mulf %164, %161 : vector<8x16xf32>
    %166 = arith.select %163, %161, %165 : vector<8x16xi1>, vector<8x16xf32>
    %c0_145 = arith.constant 0 : index
    %c0_146 = arith.constant 0 : index
    %c8_147 = arith.constant 8 : index
    %c0_148 = arith.constant 0 : index
    %167 = vector.load %arg5[%c0_145, %c0_146, %c8_147, %c0_148] : memref<1x8x16x16xf32, #tpu.memory_space<vmem>>, vector<1x8x1x16xf32>
    %168 = vector.shape_cast %167 : vector<1x8x1x16xf32> to vector<8x16xf32>
    %169 = vector.shape_cast %166 : vector<8x16xf32> to vector<1x8x1x16xf32>
    tpu.vector_store %arg5[%c0_145, %c0_146, %c8_147, %c0_148], %169 {strides = array<i32>} : memref<1x8x16x16xf32, #tpu.memory_space<vmem>>, vector<1x8x1x16xf32>,
    %c0_149 = arith.constant 0 : index
    %c162 = arith.constant 162 : index
    %170 = vector.load %arg6[%c0_149, %c162] : memref<8x384xf32, #tpu.memory_space<vmem>>, vector<8x16xf32>
    %171 = vector.broadcast %70 : vector<8x1xf32> to vector<8x16xf32>
    %172 = arith.addf %170, %171 : vector<8x16xf32>
    %cst_150 = arith.constant 0.000000e+00 : f32
    %173 = vector.broadcast %cst_150 : f32 to vector<8x16xf32>
    %174 = arith.cmpf oge, %172, %173 : vector<8x16xf32>
    %cst_151 = arith.constant 2.000000e-01 : f32
    %175 = vector.broadcast %cst_151 : f32 to vector<8x16xf32>
    %176 = arith.mulf %175, %172 : vector<8x16xf32>
    %177 = arith.select %174, %172, %176 : vector<8x16xi1>, vector<8x16xf32>
    %c0_152 = arith.constant 0 : index
    %c0_153 = arith.constant 0 : index
    %c9 = arith.constant 9 : index
    %c0_154 = arith.constant 0 : index
    %178 = vector.load %arg5[%c0_152, %c0_153, %c9, %c0_154] : memref<1x8x16x16xf32, #tpu.memory_space<vmem>>, vector<1x8x1x16xf32>
    %179 = vector.shape_cast %178 : vector<1x8x1x16xf32> to vector<8x16xf32>
    %180 = vector.shape_cast %177 : vector<8x16xf32> to vector<1x8x1x16xf32>
    tpu.vector_store %arg5[%c0_152, %c0_153, %c9, %c0_154], %180 {strides = array<i32>} : memref<1x8x16x16xf32, #tpu.memory_space<vmem>>, vector<1x8x1x16xf32>,
    %c0_155 = arith.constant 0 : index
    %c180 = arith.constant 180 : index
    %181 = vector.load %arg6[%c0_155, %c180] : memref<8x384xf32, #tpu.memory_space<vmem>>, vector<8x16xf32>
    %182 = vector.broadcast %70 : vector<8x1xf32> to vector<8x16xf32>
    %183 = arith.addf %181, %182 : vector<8x16xf32>
    %cst_156 = arith.constant 0.000000e+00 : f32
    %184 = vector.broadcast %cst_156 : f32 to vector<8x16xf32>
    %185 = arith.cmpf oge, %183, %184 : vector<8x16xf32>
    %cst_157 = arith.constant 2.000000e-01 : f32
    %186 = vector.broadcast %cst_157 : f32 to vector<8x16xf32>
    %187 = arith.mulf %186, %183 : vector<8x16xf32>
    %188 = arith.select %185, %183, %187 : vector<8x16xi1>, vector<8x16xf32>
    %c0_158 = arith.constant 0 : index
    %c0_159 = arith.constant 0 : index
    %c10 = arith.constant 10 : index
    %c0_160 = arith.constant 0 : index
    %189 = vector.load %arg5[%c0_158, %c0_159, %c10, %c0_160] : memref<1x8x16x16xf32, #tpu.memory_space<vmem>>, vector<1x8x1x16xf32>
    %190 = vector.shape_cast %189 : vector<1x8x1x16xf32> to vector<8x16xf32>
    %191 = vector.shape_cast %188 : vector<8x16xf32> to vector<1x8x1x16xf32>
    tpu.vector_store %arg5[%c0_158, %c0_159, %c10, %c0_160], %191 {strides = array<i32>} : memref<1x8x16x16xf32, #tpu.memory_space<vmem>>, vector<1x8x1x16xf32>,
    %c0_161 = arith.constant 0 : index
    %c198 = arith.constant 198 : index
    %192 = vector.load %arg6[%c0_161, %c198] : memref<8x384xf32, #tpu.memory_space<vmem>>, vector<8x16xf32>
    %193 = vector.broadcast %70 : vector<8x1xf32> to vector<8x16xf32>
    %194 = arith.addf %192, %193 : vector<8x16xf32>
    %cst_162 = arith.constant 0.000000e+00 : f32
    %195 = vector.broadcast %cst_162 : f32 to vector<8x16xf32>
    %196 = arith.cmpf oge, %194, %195 : vector<8x16xf32>
    %cst_163 = arith.constant 2.000000e-01 : f32
    %197 = vector.broadcast %cst_163 : f32 to vector<8x16xf32>
    %198 = arith.mulf %197, %194 : vector<8x16xf32>
    %199 = arith.select %196, %194, %198 : vector<8x16xi1>, vector<8x16xf32>
    %c0_164 = arith.constant 0 : index
    %c0_165 = arith.constant 0 : index
    %c11 = arith.constant 11 : index
    %c0_166 = arith.constant 0 : index
    %200 = vector.load %arg5[%c0_164, %c0_165, %c11, %c0_166] : memref<1x8x16x16xf32, #tpu.memory_space<vmem>>, vector<1x8x1x16xf32>
    %201 = vector.shape_cast %200 : vector<1x8x1x16xf32> to vector<8x16xf32>
    %202 = vector.shape_cast %199 : vector<8x16xf32> to vector<1x8x1x16xf32>
    tpu.vector_store %arg5[%c0_164, %c0_165, %c11, %c0_166], %202 {strides = array<i32>} : memref<1x8x16x16xf32, #tpu.memory_space<vmem>>, vector<1x8x1x16xf32>,
    %c0_167 = arith.constant 0 : index
    %c216 = arith.constant 216 : index
    %203 = vector.load %arg6[%c0_167, %c216] : memref<8x384xf32, #tpu.memory_space<vmem>>, vector<8x16xf32>
    %204 = vector.broadcast %70 : vector<8x1xf32> to vector<8x16xf32>
    %205 = arith.addf %203, %204 : vector<8x16xf32>
    %cst_168 = arith.constant 0.000000e+00 : f32
    %206 = vector.broadcast %cst_168 : f32 to vector<8x16xf32>
    %207 = arith.cmpf oge, %205, %206 : vector<8x16xf32>
    %cst_169 = arith.constant 2.000000e-01 : f32
    %208 = vector.broadcast %cst_169 : f32 to vector<8x16xf32>
    %209 = arith.mulf %208, %205 : vector<8x16xf32>
    %210 = arith.select %207, %205, %209 : vector<8x16xi1>, vector<8x16xf32>
    %c0_170 = arith.constant 0 : index
    %c0_171 = arith.constant 0 : index
    %c12 = arith.constant 12 : index
    %c0_172 = arith.constant 0 : index
    %211 = vector.load %arg5[%c0_170, %c0_171, %c12, %c0_172] : memref<1x8x16x16xf32, #tpu.memory_space<vmem>>, vector<1x8x1x16xf32>
    %212 = vector.shape_cast %211 : vector<1x8x1x16xf32> to vector<8x16xf32>
    %213 = vector.shape_cast %210 : vector<8x16xf32> to vector<1x8x1x16xf32>
    tpu.vector_store %arg5[%c0_170, %c0_171, %c12, %c0_172], %213 {strides = array<i32>} : memref<1x8x16x16xf32, #tpu.memory_space<vmem>>, vector<1x8x1x16xf32>,
    %c0_173 = arith.constant 0 : index
    %c234 = arith.constant 234 : index
    %214 = vector.load %arg6[%c0_173, %c234] : memref<8x384xf32, #tpu.memory_space<vmem>>, vector<8x16xf32>
    %215 = vector.broadcast %70 : vector<8x1xf32> to vector<8x16xf32>
    %216 = arith.addf %214, %215 : vector<8x16xf32>
    %cst_174 = arith.constant 0.000000e+00 : f32
    %217 = vector.broadcast %cst_174 : f32 to vector<8x16xf32>
    %218 = arith.cmpf oge, %216, %217 : vector<8x16xf32>
    %cst_175 = arith.constant 2.000000e-01 : f32
    %219 = vector.broadcast %cst_175 : f32 to vector<8x16xf32>
    %220 = arith.mulf %219, %216 : vector<8x16xf32>
    %221 = arith.select %218, %216, %220 : vector<8x16xi1>, vector<8x16xf32>
    %c0_176 = arith.constant 0 : index
    %c0_177 = arith.constant 0 : index
    %c13 = arith.constant 13 : index
    %c0_178 = arith.constant 0 : index
    %222 = vector.load %arg5[%c0_176, %c0_177, %c13, %c0_178] : memref<1x8x16x16xf32, #tpu.memory_space<vmem>>, vector<1x8x1x16xf32>
    %223 = vector.shape_cast %222 : vector<1x8x1x16xf32> to vector<8x16xf32>
    %224 = vector.shape_cast %221 : vector<8x16xf32> to vector<1x8x1x16xf32>
    tpu.vector_store %arg5[%c0_176, %c0_177, %c13, %c0_178], %224 {strides = array<i32>} : memref<1x8x16x16xf32, #tpu.memory_space<vmem>>, vector<1x8x1x16xf32>,
    %c0_179 = arith.constant 0 : index
    %c252 = arith.constant 252 : index
    %225 = vector.load %arg6[%c0_179, %c252] : memref<8x384xf32, #tpu.memory_space<vmem>>, vector<8x16xf32>
    %226 = vector.broadcast %70 : vector<8x1xf32> to vector<8x16xf32>
    %227 = arith.addf %225, %226 : vector<8x16xf32>
    %cst_180 = arith.constant 0.000000e+00 : f32
    %228 = vector.broadcast %cst_180 : f32 to vector<8x16xf32>
    %229 = arith.cmpf oge, %227, %228 : vector<8x16xf32>
    %cst_181 = arith.constant 2.000000e-01 : f32
    %230 = vector.broadcast %cst_181 : f32 to vector<8x16xf32>
    %231 = arith.mulf %230, %227 : vector<8x16xf32>
    %232 = arith.select %229, %227, %231 : vector<8x16xi1>, vector<8x16xf32>
    %c0_182 = arith.constant 0 : index
    %c0_183 = arith.constant 0 : index
    %c14 = arith.constant 14 : index
    %c0_184 = arith.constant 0 : index
    %233 = vector.load %arg5[%c0_182, %c0_183, %c14, %c0_184] : memref<1x8x16x16xf32, #tpu.memory_space<vmem>>, vector<1x8x1x16xf32>
    %234 = vector.shape_cast %233 : vector<1x8x1x16xf32> to vector<8x16xf32>
    %235 = vector.shape_cast %232 : vector<8x16xf32> to vector<1x8x1x16xf32>
    tpu.vector_store %arg5[%c0_182, %c0_183, %c14, %c0_184], %235 {strides = array<i32>} : memref<1x8x16x16xf32, #tpu.memory_space<vmem>>, vector<1x8x1x16xf32>,
    %c0_185 = arith.constant 0 : index
    %c270 = arith.constant 270 : index
    %236 = vector.load %arg6[%c0_185, %c270] : memref<8x384xf32, #tpu.memory_space<vmem>>, vector<8x16xf32>
    %237 = vector.broadcast %70 : vector<8x1xf32> to vector<8x16xf32>
    %238 = arith.addf %236, %237 : vector<8x16xf32>
    %cst_186 = arith.constant 0.000000e+00 : f32
    %239 = vector.broadcast %cst_186 : f32 to vector<8x16xf32>
    %240 = arith.cmpf oge, %238, %239 : vector<8x16xf32>
    %cst_187 = arith.constant 2.000000e-01 : f32
    %241 = vector.broadcast %cst_187 : f32 to vector<8x16xf32>
    %242 = arith.mulf %241, %238 : vector<8x16xf32>
    %243 = arith.select %240, %238, %242 : vector<8x16xi1>, vector<8x16xf32>
    %c0_188 = arith.constant 0 : index
    %c0_189 = arith.constant 0 : index
    %c15 = arith.constant 15 : index
    %c0_190 = arith.constant 0 : index
    %244 = vector.load %arg5[%c0_188, %c0_189, %c15, %c0_190] : memref<1x8x16x16xf32, #tpu.memory_space<vmem>>, vector<1x8x1x16xf32>
    %245 = vector.shape_cast %244 : vector<1x8x1x16xf32> to vector<8x16xf32>
    %246 = vector.shape_cast %243 : vector<8x16xf32> to vector<1x8x1x16xf32>
    tpu.vector_store %arg5[%c0_188, %c0_189, %c15, %c0_190], %246 {strides = array<i32>} : memref<1x8x16x16xf32, #tpu.memory_space<vmem>>, vector<1x8x1x16xf32>,
    return
  }
  func.func @transform_0(%arg0: i32, %arg1: i32) -> (i32, i32, i32) {
    %c0_i32 = arith.constant 0 : i32
    %c0_i32_0 = arith.constant 0 : i32
    %c0_i32_1 = arith.constant 0 : i32
    %c0_i32_2 = arith.constant 0 : i32
    return %c0_i32, %c0_i32_0, %c0_i32_1 : i32, i32, i32
  }
  func.func @transform_1(%arg0: i32, %arg1: i32) -> (i32, i32, i32) {
    %c0_i32 = arith.constant 0 : i32
    %c0_i32_0 = arith.constant 0 : i32
    %c0_i32_1 = arith.constant 0 : i32
    return %arg0, %c0_i32, %c0_i32_0 : i32, i32, i32
  }
  func.func @transform_2(%arg0: i32, %arg1: i32) -> (i32, i32) {
    %c0_i32 = arith.constant 0 : i32
    %c0_i32_0 = arith.constant 0 : i32
    %c0_i32_1 = arith.constant 0 : i32
    return %c0_i32, %c0_i32_0 : i32, i32
  }
  func.func @transform_3(%arg0: i32, %arg1: i32) -> (i32, i32, i32, i32) {
    %c0_i32 = arith.constant 0 : i32
    %c0_i32_0 = arith.constant 0 : i32
    %c0_i32_1 = arith.constant 0 : i32
    return %arg0, %c0_i32, %arg1, %c0_i32_0 : i32, i32, i32, i32
  }
}

</mosaic_0001>

<bundles_post_ra>
// kernel: conv_block_forward.1
= control target key start
LH: loop header
LB: loop body
LE: loop exit
PB: predicated region body
PF: predicated region fallthrough
CT: control target
= control target key end

     0   :  { %8 = vsyncpa [#allocation4], 0  ;;  %s5280_s0 = inlined_call_operand.vmem [shape: f32[9,8,8], index: 0, kind: input, shape index: {}]   ;;  %s5281_s1 = inlined_call_operand.vmem [shape: f32[2,8,512], index: 1, kind: input, shape index: {}]   ;;  %s5282_s2 = inlined_call_operand.vmem [shape: f32[8,1], index: 2, kind: input, shape index: {}]   ;;  %s5283_s3 = inlined_call_operand.hbm [shape: f32[2,8,16,16], index: 3, kind: output, shape index: {}]  }
   0x1   :  { %10 = vsyncpa [#allocation4 + $0x1], 0  ;;  %s4171_s12 = smov 0   ;;  %s4173_s13 = smov 0  }
   0x2   :  { %s4175_s14 = smov 0   ;;  %s4177_s15 = smov 0  }
   0x3   :  { %s4179_s16 = smov 0   ;;  %s4181_s17 = smov 0  }
   0x4 LB: > { %s3840_s18 = sadd.s32 4294967295, %s4121_s17   ;;  %s3841_s19 = sadd.s32 4294967294, %s4121_s17   ;;  %s4121_s17 = sphi %s4181_s17, %s16_s17   ;;  %s4117_s16 = sphi %s4179_s16, %s5293_s16   ;;  %s4113_s15 = sphi %s4177_s15, %s5292_s15   ;;  %s4109_s14 = sphi %s4175_s14, %s5291_s14   ;;  %s4105_s13 = sphi %s4173_s13, %s5290_s13   ;;  %s4101_s12 = sphi %s4171_s12, %s5289_s12  }
   0x5   : > { %s28_s20 = sadd.s32 1, %s4117_s16  ;;  %s105_s21 = sadd.s32 1, %s4109_s14 }
   0x6   : > { %p30_p0 = scmp.ge.s32.totalorder %s28_s20, 2  ;;  %p115_p1 = scmp.ne.s32.totalorder %s4109_s14, %s4105_s13 }
   0x7   : > { %p116_p2 = scmp.eq.s32.totalorder %s3840_s18, 1  ;;  %p121_p3 = scmp.ne.s32.totalorder %s4105_s13, %s4101_s12 }
   0x8   : > { %s5295_s20 = smov (%p30_p0, %s28_s20), 0  ;;  %p122_p5 = scmp.eq.s32.totalorder %s3841_s19, 1 }
   0x9   : > { %p4211_p4 = por %p116_p2, %p115_p1  ;;  %s100_s23 = ssub.s32 %s4117_s16, %s5295_s20 }
   0xa   : > { %p3844_p6 = scmp.ge.s32.totalorder %s4121_s17, 1  ;;  %p103_p7 = scmp.eq.s32.totalorder %s100_s23, 0 }
   0xb   : > { %p4218_p8 = por %p122_p5, %p121_p3  ;;  %p154_p9 = scmp.lt.s32.totalorder %s4121_s17, 3 }
   0xc   : > { %s4224_s25 = scalar_select %p103_p7, %s4109_s14, %s105_s21  }
   0xd   : > { %p155_p10 = pnand %p3844_p6, %p154_p9 }
   0xe   : > { %p178_p11 = scmp.lt.s32.totalorder (!%p155_p10), %s4113_s15, 1  ;;  %v4123_v0 = vmov (!%p155_p10), 0.0   ;;  %s4124_s4 = smov (!%p155_p10), 127   ;;  %v187_v4 = vld [vmem:[%s5280_s0] sm:$0xff] (!%p155_p10)  ;;  %vm188_vm0 = vcmask (!%p155_p10), 64512   ;;  %vm4126_vm1 = vmmov (!%p155_p10), 0  }
   0xf   : > { %158 = sbr.rel (%p155_p10) target bundleno = 836 (0x344), region = 32  ;;  %256 = vmatprep.mubr.f32.mxu0 (!%p155_p10), %v4123_v0  ;;  %3899 = vmatprep.subr.mxu1 (!%p155_p10), %v4123_v0  ;;  %s4125_s7 = smov (!%p155_p10), 126   ;;  %v4132_v6 = vmov (!%p155_p10), 0   ;;  %v1760_v7 = vld [vmem:[%s5282_s2] sm:$0xff] (!%p155_p10)  ;;  %vm354_vm2 = vcmask (!%p155_p10), 1039360   ;;  %v3850_v13 = vld [vmem:[%s5280_s0 + $0x8] sm:$0xff] (!%p155_p10) }
  0x10   : > { %3901 = vmatprep.mubr.msk.f32.mxu1 (!%p155_p10), %vm4126_vm1, %v4123_v0  ;;  %s4127_s8 = smov (!%p155_p10), 110   ;;  %s4128_s9 = smov (!%p155_p10), 109   ;;  %4042 = vset.pattern.permute.xlu0 (!%p155_p10), %v4132_v6  ;;  %vm532_vm3 = vcmask (!%p155_p10), 1031168   ;;  %vm710_vm4 = vcmask (!%p155_p10), 900096   ;;  %v3853_v22 = vld [vmem:[%s5280_s0 + $0x10] sm:$0xff] (!%p155_p10)  ;;  %vm888_vm5 = vcmask (!%p155_p10), 891904  }
  0x11   : > { %s4129_s10 = smov (!%p155_p10), 108   ;;  %s4130_s11 = smov (!%p155_p10), 92   ;;  %v3856_v29 = vld [vmem:[%s5280_s0 + $0x18] sm:$0xff] (!%p155_p10)  ;;  %vm1066_vm6 = vcmask (!%p155_p10), 883712   ;;  %v3859_v38 = vld [vmem:[%s5280_s0 + $0x20] sm:$0xff] (!%p155_p10)  ;;  %v3862_v46 = vld [vmem:[%s5280_s0 + $0x28] sm:$0xff] (!%p155_p10) }
  0x12   : > { %s4131_s18 = smov (!%p155_p10), 91   ;;  %s4133_s19 = smov (!%p155_p10), 90   ;;  %vm1244_vm7 = vcmask (!%p155_p10), 752640   ;;  %v3865_v54 = vld [vmem:[%s5280_s0 + $0x30] sm:$0xff] (!%p155_p10)  ;;  %vm1422_vm8 = vcmask (!%p155_p10), 744448   ;;  %v3868_v61 = vld [vmem:[%s5280_s0 + $0x38] sm:$0xff] (!%p155_p10) }
  0x13   : > { %vm1600_vm9 = vcmask (!%p155_p10), 736256   ;;  %v3871_v6 = vld [vmem:[%s5280_s0 + $0x40] sm:$0xff] (!%p155_p10)  ;;  %vm1829_vm13 = vcmask (!%p155_p10), 122880   ;;  %s4137_s5 = smov (!%p155_p10), 56   ;;  %s4138_s6 = smov (!%p155_p10), 38   ;;  %vm2710_vm14 = vcmask (!%p155_p10), 15360  }
  0x14   : > { %s4144_s21 = smov (!%p155_p10), 58   ;;  %s4145_s23 = smov (!%p155_p10), 40   ;;  %vm3607_vm15 = vcmask (!%p155_p10), 31744  }
  0x16   : > { %s179_s26 = scalar_select %p178_p11, %s4113_s15, 1 }
  0x18   : > { %s3879_s27 = sshll.u32 %s179_s26, 5  ;;  %s4146_s26 = smov 22  }
  0x19   : > { %s4233_s30 = scalar_lea.vmem %s5281_s1, %s3879_s27  ;;  %s175_s27 = sand.u32 1, %s4105_s13  }
  0x1a   : > { %v337_v1 = vld [vmem:[%s4233_s30 + $0x8] sm:$0xff]  ;;  %v336_v2 = vld [vmem:[%s4233_s30] sm:$0xff]  ;;  %v338_v3 = vld [vmem:[%s4233_s30 + $0x10] sm:$0xff]  ;;  %s3845_s28 = sshll.u32 %s175_s27, 7 }
  0x1b   : > { %348 = vrot.lane.b32.xlu0 %v337_v1, %s4124_s4  ;;  %346 = vrot.lane.b32.xlu1 %v336_v2, %s4124_s4  ;;  %v339_v5 = vld [vmem:[%s4233_s30 + $0x18] sm:$0xff]  ;;  %s4391_s29 = scalar_lea.vmem [#allocation3], %s3845_s28  ;;  %s4135_s30 = smov 114  }
  0x1c   : > { %192 = vmatprep.subr.mxu0 %v337_v1  ;;  %3900 = vmatpush3.msra.mxu1 %v338_v3  ;;  %s4147_s28 = smov 4  }
  0x1d   : > { %193 = vmatpush1.msra.mxu0 %v336_v2  ;;  %3904 = vmatprep.subr.mxu1 %v4123_v0 }
  0x1e   : > { %3848 = vmatmul.mubr.msk.f32.vlgmr.msra.gmra.mrb[0].mxu0 %vm188_vm0, %v187_v4  ;;  %3902 = vmatmul.mubr.msk.f32.vlgmr.msra.gmra.mrb[0].mxu1 %vm188_vm0, %v187_v4 }
  0x1f   : > { %350 = vrot.lane.b32.xlu0 %v338_v3, %s4124_s4  ;;  %526 = vrot.lane.b32.xlu1 %v337_v1, %s4125_s7 }
  0x20   : > { %428 = vmatprep.mubr.f32.mxu0 %v4123_v0  ;;  %3906 = vmatprep.mubr.msk.f32.mxu1 %vm4126_vm1, %v4123_v0 }
  0x23   : > { %528 = vrot.lane.b32.xlu0 %v338_v3, %s4125_s7  ;;  %524 = vrot.lane.b32.xlu1 %v336_v2, %s4125_s7 }
  0x27   : > { %704 = vrot.lane.b32.xlu0 %v337_v1, %s4127_s8  ;;  %706 = vrot.lane.b32.xlu1 %v338_v3, %s4127_s8 }
  0x2b   : > { %702 = vrot.lane.b32.xlu0 %v336_v2, %s4127_s8  ;;  %882 = vrot.lane.b32.xlu1 %v337_v1, %s4128_s9 }
  0x2f   : > { %884 = vrot.lane.b32.xlu0 %v338_v3, %s4128_s9  ;;  %880 = vrot.lane.b32.xlu1 %v336_v2, %s4128_s9 }
  0x33   : > { %352 = vrot.lane.b32.xlu0 %v339_v5, %s4124_s4  ;;  %530 = vrot.lane.b32.xlu1 %v339_v5, %s4125_s7  ;;  %s4136_s4 = smov 74   ;;  %s4139_s7 = smov 20  }
  0x37   : > { %1060 = vrot.lane.b32.xlu0 %v337_v1, %s4129_s10  ;;  %1062 = vrot.lane.b32.xlu1 %v338_v3, %s4129_s10 }
  0x3b   : > { %1058 = vrot.lane.b32.xlu0 %v336_v2, %s4129_s10  ;;  %708 = vrot.lane.b32.xlu1 %v339_v5, %s4127_s8 }
  0x3f   : > { %886 = vrot.lane.b32.xlu0 %v339_v5, %s4128_s9  ;;  %1238 = vrot.lane.b32.xlu1 %v337_v1, %s4130_s11  ;;  %s4140_s9 = smov 112  }
  0x43   : > { %1240 = vrot.lane.b32.xlu0 %v338_v3, %s4130_s11  ;;  %1236 = vrot.lane.b32.xlu1 %v336_v2, %s4130_s11 }
  0x47   : > { %1064 = vrot.lane.b32.xlu0 %v339_v5, %s4129_s10  ;;  %1242 = vrot.lane.b32.xlu1 %v339_v5, %s4130_s11  ;;  %s4141_s10 = smov 94  }
  0x4b   : > { %1416 = vrot.lane.b32.xlu0 %v337_v1, %s4131_s18  ;;  %1418 = vrot.lane.b32.xlu1 %v338_v3, %s4131_s18 }
  0x4f   : > { %1414 = vrot.lane.b32.xlu0 %v336_v2, %s4131_s18  ;;  %1420 = vrot.lane.b32.xlu1 %v339_v5, %s4131_s18  ;;  %s4142_s18 = smov 76  }
  0x53   : > { %1594 = vrot.lane.b32.xlu0 %v337_v1, %s4133_s19  ;;  %1596 = vrot.lane.b32.xlu1 %v338_v3, %s4133_s19 }
  0x57   : > { %1598 = vrot.lane.b32.xlu0 %v339_v5, %s4133_s19  ;;  %1592 = vrot.lane.b32.xlu1 %v336_v2, %s4133_s19  ;;  %s4143_s19 = smov 2  }
  0x5b   : > { %1764 = vperm.xlu0 %4042, %v1760_v7  }
  0x8d   : > { %v349_v8 = vpop.permute.xlu0 %348  ;;  %v347_v9 = vpop.permute.xlu1 %346 }
  0x8e   : > { %v355_v14 = vsel %vm354_vm2, %v347_v9, %v349_v8 }
  0x91   : > { %v351_v10 = vpop.permute.xlu0 %350  ;;  %v527_v11 = vpop.permute.xlu1 %526 }
  0x92   : > { %v356_v12 = vsel %vm354_vm2, %v349_v8, %v351_v10 }
  0x93   : > { %364 = vmatprep.subr.mxu0 %v356_v12 }
  0x94   : > { %365 = vmatpush1.msra.mxu0 %v355_v14 }
  0x95   : > { %v529_v15 = vpop.permute.xlu0 %528  ;;  %v525_v16 = vpop.permute.xlu1 %524  ;;  %3851 = vmatmul.mubr.msk.f32.vlgmr.msra.gmra.mrb[0].mxu0 %vm188_vm0, %v3850_v13 }
  0x96   : > { %v533_v17 = vsel %vm532_vm3, %v525_v16, %v527_v11  ;;  %v534_v18 = vsel %vm532_vm3, %v527_v11, %v529_v15  ;;  %606 = vmatprep.mubr.f32.mxu0 %v4123_v0 }
  0x97   : > { %542 = vmatprep.subr.mxu0 %v534_v18 }
  0x98   : > { %543 = vmatpush1.msra.mxu0 %v533_v17 }
  0x99   : > { %v705_v19 = vpop.permute.xlu0 %704  ;;  %v707_v20 = vpop.permute.xlu1 %706 }
  0x9a   : > { %v712_v21 = vsel %vm710_vm4, %v705_v19, %v707_v20 }
  0x9b   : > { %720 = vmatprep.subr.mxu0 %v712_v21 }
  0x9d   : > { %v703_v23 = vpop.permute.xlu0 %702  ;;  %v883_v24 = vpop.permute.xlu1 %882  ;;  %3854 = vmatmul.mubr.msk.f32.vlgmr.msra.gmra.mrb[0].mxu0 %vm188_vm0, %v3853_v22 }
  0x9e   : > { %v711_v25 = vsel %vm710_vm4, %v703_v23, %v705_v19  ;;  %784 = vmatprep.mubr.f32.mxu0 %v4123_v0 }
  0x9f   : > { %721 = vmatpush1.msra.mxu0 %v711_v25 }
  0xa1   : > { %v885_v26 = vpop.permute.xlu0 %884  ;;  %v881_v27 = vpop.permute.xlu1 %880 }
  0xa2   : > { %v890_v28 = vsel %vm888_vm5, %v883_v24, %v885_v26  ;;  %v889_v30 = vsel %vm888_vm5, %v881_v27, %v883_v24 }
  0xa3   : > { %898 = vmatprep.subr.mxu0 %v890_v28 }
  0xa5   : > { %v353_v31 = vpop.permute.xlu0 %352  ;;  %v531_v32 = vpop.permute.xlu1 %530  ;;  %3857 = vmatmul.mubr.msk.f32.vlgmr.msra.gmra.mrb[0].mxu0 %vm188_vm0, %v3856_v29 }
  0xa6   : > { %v357_v33 = vsel %vm354_vm2, %v351_v10, %v353_v31  ;;  %899 = vmatpush1.msra.mxu0 %v889_v30  ;;  %962 = vmatprep.mubr.f32.mxu0 %v4123_v0  ;;  %v535_v34 = vsel %vm532_vm3, %v529_v15, %v531_v32  ;;  %v4134_v31 = vmov 1966171168  }
  0xa7   : > { %3905 = vmatpush3.msra.mxu1 %v357_v33  ;;  %v1774_v32 = vunpack.c.l.s4 %v4134_v31  ;;  %v1776_v33 = vlaneseq }
  0xa8   : > { %3909 = vmatprep.subr.mxu1 %v4123_v0  ;;  %3907 = vmatmul.mubr.msk.f32.vlgmr.msra.gmra.mrb[2].mxu1 %vm188_vm0, %v3850_v13 }
  0xa9   : > { %v1061_v35 = vpop.permute.xlu0 %1060  ;;  %v1063_v36 = vpop.permute.xlu1 %1062  ;;  %3910 = vmatpush3.msra.mxu1 %v535_v34  ;;  %3911 = vmatprep.mubr.msk.f32.mxu1 %vm4126_vm1, %v4123_v0 }
  0xaa   : > { %v1068_v37 = vsel %vm1066_vm6, %v1061_v35, %v1063_v36  ;;  %3914 = vmatprep.subr.mxu1 %v4123_v0 }
  0xab   : > { %1076 = vmatprep.subr.mxu0 %v1068_v37 }
  0xac   : > { %3912 = vmatmul.mubr.msk.f32.vlgmr.msra.gmra.mrb[4].mxu1 %vm188_vm0, %v3853_v22 }
  0xad   : > { %v1059_v39 = vpop.permute.xlu0 %1058  ;;  %v709_v40 = vpop.permute.xlu1 %708  ;;  %3860 = vmatmul.mubr.msk.f32.vlgmr.msra.gmra.mrb[0].mxu0 %vm188_vm0, %v3859_v38  ;;  %3916 = vmatprep.mubr.msk.f32.mxu1 %vm4126_vm1, %v4123_v0 }
  0xae   : > { %v1067_v41 = vsel %vm1066_vm6, %v1059_v39, %v1061_v35  ;;  %v713_v42 = vsel %vm710_vm4, %v707_v20, %v709_v40  ;;  %1140 = vmatprep.mubr.f32.mxu0 %v4123_v0  ;;  %v1775_v35 = vunpack.c.0.s8 %v1774_v32 }
  0xaf   : > { %3915 = vmatpush3.msra.mxu1 %v713_v42  ;;  %1077 = vmatpush1.msra.mxu0 %v1067_v41 }
  0xb0   : > { %3917 = vmatmul.mubr.msk.f32.vlgmr.msra.gmra.mrb[6].mxu1 %vm188_vm0, %v3856_v29  ;;  %3919 = vmatprep.subr.mxu1 %v4123_v0 }
  0xb1   : > { %v887_v43 = vpop.permute.xlu0 %886  ;;  %v1239_v44 = vpop.permute.xlu1 %1238  ;;  %3921 = vmatprep.mubr.msk.f32.mxu1 %vm4126_vm1, %v4123_v0 }
  0xb2   : > { %v891_v45 = vsel %vm888_vm5, %v885_v26, %v887_v43 }
  0xb3   : > { %3920 = vmatpush3.msra.mxu1 %v891_v45 }
  0xb4   : > { %3922 = vmatmul.mubr.msk.f32.vlgmr.msra.gmra.mrb[8].mxu1 %vm188_vm0, %v3859_v38  ;;  %3924 = vmatprep.subr.mxu1 %v4123_v0 }
  0xb5   : > { %v1241_v47 = vpop.permute.xlu0 %1240  ;;  %v1237_v48 = vpop.permute.xlu1 %1236  ;;  %3863 = vmatmul.mubr.msk.f32.vlgmr.msra.gmra.mrb[0].mxu0 %vm188_vm0, %v3862_v46  ;;  %3926 = vmatprep.mubr.msk.f32.mxu1 %vm4126_vm1, %v4123_v0 }
  0xb6   : > { %v1245_v49 = vsel %vm1244_vm7, %v1237_v48, %v1239_v44  ;;  %v1246_v50 = vsel %vm1244_vm7, %v1239_v44, %v1241_v47  ;;  %1318 = vmatprep.mubr.f32.mxu0 %v4123_v0 }
  0xb7   : > { %1254 = vmatprep.subr.mxu0 %v1246_v50 }
  0xb8   : > { %1255 = vmatpush1.msra.mxu0 %v1245_v49 }
  0xb9   : > { %v1065_v51 = vpop.permute.xlu0 %1064  ;;  %v1243_v52 = vpop.permute.xlu1 %1242 }
  0xba   : > { %v1069_v53 = vsel %vm1066_vm6, %v1063_v36, %v1065_v51  ;;  %v1247_v55 = vsel %vm1244_vm7, %v1241_v47, %v1243_v52  ;;  %v4354_v36 = vshrl.u32 %v1776_v33, 7 }
  0xbb   : > { %3925 = vmatpush3.msra.mxu1 %v1069_v53 }
  0xbc   : > { %3927 = vmatmul.mubr.msk.f32.vlgmr.msra.gmra.mrb[10].mxu1 %vm188_vm0, %v3862_v46  ;;  %3929 = vmatprep.subr.mxu1 %v4123_v0  ;;  %v4358_v44 = vsub.s32 %v1775_v35, %v4354_v36 }
  0xbd   : > { %v1417_v56 = vpop.permute.xlu0 %1416  ;;  %v1419_v57 = vpop.permute.xlu1 %1418  ;;  %3866 = vmatmul.mubr.msk.f32.vlgmr.msra.gmra.mrb[0].mxu0 %vm188_vm0, %v3865_v54  ;;  %3930 = vmatpush3.msra.mxu1 %v1247_v55 }
  0xbe   : > { %3931 = vmatprep.mubr.msk.f32.mxu1 %vm4126_vm1, %v4123_v0  ;;  %v1424_v58 = vsel %vm1422_vm8, %v1417_v56, %v1419_v57  ;;  %3934 = vmatprep.subr.mxu1 %v4123_v0 }
  0xbf   : > { %1432 = vmatprep.subr.mxu0 %v1424_v58  ;;  %1496 = vmatprep.mubr.f32.mxu0 %v4123_v0 }
  0xc0   : > { %3932 = vmatmul.mubr.msk.f32.vlgmr.msra.gmra.mrb[12].mxu1 %vm188_vm0, %v3865_v54  ;;  %v4368_v54 = vsub.s32 0, %v4354_v36 }
  0xc1   : > { %v1415_v59 = vpop.permute.xlu0 %1414  ;;  %v1421_v60 = vpop.permute.xlu1 %1420  ;;  %3936 = vmatprep.mubr.msk.f32.mxu1 %vm4126_vm1, %v4123_v0 }
  0xc2   : > { %v1423_v62 = vsel %vm1422_vm8, %v1415_v59, %v1417_v56  ;;  %v1425_v63 = vsel %vm1422_vm8, %v1419_v57, %v1421_v60 }
  0xc3   : > { %1433 = vmatpush1.msra.mxu0 %v1423_v62  ;;  %3935 = vmatpush3.msra.mxu1 %v1425_v63 }
  0xc4   : > { %3937 = vmatmul.mubr.msk.f32.vlgmr.msra.gmra.mrb[14].mxu1 %vm188_vm0, %v3868_v61  ;;  %3939 = vmatprep.subr.mxu1 %v4123_v0 }
  0xc5   : > { %v1595_v1 = vpop.permute.xlu0 %1594  ;;  %v1597_v2 = vpop.permute.xlu1 %1596  ;;  %3869 = vmatmul.mubr.msk.f32.vlgmr.msra.gmra.mrb[0].mxu0 %vm188_vm0, %v3868_v61  ;;  %3941 = vmatprep.mubr.msk.f32.mxu1 %vm4126_vm1, %v4123_v0 }
  0xc6   : > { %v1602_v3 = vsel %vm1600_vm9, %v1595_v1, %v1597_v2  ;;  %1674 = vmatprep.mubr.f32.mxu0 %v4123_v0 }
  0xc7   : > { %1610 = vmatprep.subr.mxu0 %v1602_v3 }
  0xc9   : > { %v1599_v4 = vpop.permute.xlu0 %1598  ;;  %v1593_v5 = vpop.permute.xlu1 %1592 }
  0xca   : > { %v1603_v7 = vsel %vm1600_vm9, %v1597_v2, %v1599_v4  ;;  %v1601_v8 = vsel %vm1600_vm9, %v1593_v5, %v1595_v1 }
  0xcb   : > { %1611 = vmatpush1.msra.mxu0 %v1601_v8  ;;  %3940 = vmatpush3.msra.mxu1 %v1603_v7 }
  0xcc   : > { %3942 = vmatmul.mubr.msk.f32.vlgmr.msra.gmra.mrb[16].mxu1 %vm188_vm0, %v3871_v6 }
  0xcd   : > { %3872 = vmatmul.mubr.msk.f32.vlgmr.msra.gmra.mrb[0].mxu0 %vm188_vm0, %v3871_v6 }
  0xda   : > { %v1765_v34 = vpop.permute.xlu0 %1764 }
  0xf1   : > { %v329_v9 = vpop.f32.mrb[0].mxu1 }
  0xf2   : > { %v3903_v10 = vpop.f32.mrb[1].mxu1 }
 0x17b   : > { %v501_v11 = vpop.f32.mrb[2].mxu1 }
 0x17c   : > { %v510_v12 = vadd.f32 %v501_v11, %v329_v9  ;;  %v3908_v0 = vpop.f32.mrb[3].mxu1 }
 0x17f   : > { %v679_v13 = vpop.f32.mrb[4].mxu1 }
 0x180   : > { %v688_v14 = vadd.f32 %v679_v13, %v510_v12  ;;  %v3913_v15 = vpop.f32.mrb[5].mxu1 }
 0x183   : > { %v857_v16 = vpop.f32.mrb[6].mxu1 }
 0x184   : > { %v866_v17 = vadd.f32 %v857_v16, %v688_v14  ;;  %v3918_v18 = vpop.f32.mrb[7].mxu1 }
 0x187   : > { %v1035_v19 = vpop.f32.mrb[8].mxu1 }
 0x188   : > { %v1044_v20 = vadd.f32 %v1035_v19, %v866_v17  ;;  %v3923_v21 = vpop.f32.mrb[9].mxu1 }
 0x18f   : > { %v1213_v22 = vpop.f32.mrb[10].mxu1 }
 0x190   : > { %v1222_v23 = vadd.f32 %v1213_v22, %v1044_v20  ;;  %v3928_v24 = vpop.f32.mrb[11].mxu1 }
 0x193   : > { %v1391_v25 = vpop.f32.mrb[12].mxu1 }
 0x194   : > { %v1400_v26 = vadd.f32 %v1391_v25, %v1222_v23  ;;  %v3933_v27 = vpop.f32.mrb[13].mxu1 }
 0x197   : > { %v1569_v28 = vpop.f32.mrb[14].mxu1 }
 0x198   : > { %v1578_v29 = vadd.f32 %v1569_v28, %v1400_v26  ;;  %v3938_v30 = vpop.f32.mrb[15].mxu1 }
 0x19f   : > { %v1747_v37 = vpop.f32.mrb[16].mxu1 }
 0x1a0   : > { %v1756_v38 = vadd.f32 %v1747_v37, %v1578_v29  ;;  %v1676_v39 = vpop.f32.mrb[0].mxu0  ;;  %v3943_v40 = vpop.f32.mrb[17].mxu1 }
 0x1a1   : > { %v1767_v41 = vadd.f32 %v1765_v34, %v1676_v39  ;;  %v1678_v42 = vpop.f32.mrb[1].mxu0 }
 0x1a2   : > { %v3452_v43 = vadd.f32 %v1765_v34, %v1756_v38  ;;  %v2555_v45 = vadd.f32 %v1765_v34, %v1678_v42 }
 0x1a3   : > { %vm1768_vm10 = vcmp.ge.f32.partialorder %v1767_v41, 0.0  ;;  %v1769_v46 = vmul.f32 0.2, %v1767_v41 }
 0x1a4   : > { %vm3454_vm11 = vcmp.ge.f32.partialorder %v3452_v43, 0.0  ;;  %v3456_v47 = vmul.f32 0.2, %v3452_v43  ;;  %vm2557_vm12 = vcmp.ge.f32.partialorder %v2555_v45, 0.0  ;;  %v2559_v48 = vmul.f32 0.2, %v2555_v45 }
 0x1a5   : > { %v1770_v49 = vsel %vm1768_vm10, %v1767_v41, %v1769_v46 }
 0x1a6   : > { %v4362_v50 = vsel %vm3454_vm11, %v3452_v43, %v3456_v47  ;;  %v1772_v51 = vcombine.high %v1770_v49, %v1770_v49  ;;  %v1779_v52 = vrot.slane %v1770_v49, %v4358_v44  ;;  %v4365_v53 = vsel %vm2557_vm12, %v2555_v45, %v2559_v48 }
 0x1a7   : > { %v2741_v55 = vcombine.high %v4365_v53, %v4365_v53  ;;  %v3645_v56 = vrot.slane %v4362_v50, %v4358_v44  ;;  %v2564_v60 = vcombine.low %v1770_v49, %v4365_v53  ;;  %v2748_v61 = vrot.slane %v4365_v53, %v4358_v44 }
 0x1a8   : > { %v1786_v57 = vrot.slane %v1772_v51, %v4358_v44  ;;  %v1787_v58 = vcombine.high %v1779_v52, %v1779_v52  ;;  %v1795_v59 = vrot.slane %v1779_v52, %v4358_v44  ;;  %v3638_v1 = vcombine.high %v4362_v50, %v4362_v50 }
 0x1a9   : > { %v4380_v62 = vrot.slane %v2741_v55, %v4358_v44  ;;  %v3661_v63 = vrot.slane %v3645_v56, %v4358_v44  ;;  %v3653_v11 = vcombine.high %v3645_v56, %v3645_v56  ;;  %v2756_v13 = vcombine.high %v2748_v61, %v2748_v61 }
 0x1aa   : > { %v1788_v2 = vcombine.high %v1786_v57, %v1786_v57  ;;  %v4386_v3 = vrot.slane %v1786_v57, %v4358_v44  ;;  %v1809_v4 = vrot.slane %v1787_v58, %v4358_v44  ;;  %v4389_v5 = vcombine.high %v1795_v59, %v1795_v59  ;;  %1830 = vst.msk [vmem:[%s4391_s29] sm:$0x1] %vm1829_vm13, %v1795_v59 }
 0x1ab   : > { %v4397_v6 = vrot.slane %v4380_v62, %v4358_v44  ;;  %v3690_v10 = vrot.slane %v3661_v63, %v4368_v54  ;;  %v3683_v12 = vcombine.high %v3661_v63, %v3661_v63  ;;  %v3652_v0 = vrot.slane %v3638_v1, %v4358_v44 }
 0x1ac   : > { %v4400_v7 = vrot.slane %v1788_v2, %v4358_v44  ;;  %v4404_v8 = vcombine.high %v4386_v3, %v4386_v3  ;;  %v1819_v9 = vcombine.high %v1809_v4, %v1809_v4  ;;  %1831 = vst.msk [vmem:[%s4391_s29 + $0x10] sm:$0x1] %vm1829_vm13, %v1809_v4  ;;  %1832 = vst.msk [vmem:[%s4391_s29 + $0x20] sm:$0x1] %vm1829_vm13, %v4389_v5 }
 0x1ad   : > { %1834 = vst.msk [vmem:[%s4391_s29 + $0x40] sm:$0x1] %vm1829_vm13, %v4386_v3  ;;  %v4425_v14 = vrot.slane %v2748_v61, %v4358_v44  ;;  %v2572_v15 = vrot.slane %v2564_v60, %v4358_v44  ;;  %v2565_v16 = vcombine.high %v1770_v49, %v4365_v53  ;;  %3719 = vrot.lane.b32.xlu0 %v3690_v10, %s4135_s30  ;;  %v4495_v49 = vsub.s32 1, %v4354_v36 }
 0x1ae   : > { %1833 = vst.msk [vmem:[%s4391_s29 + $0x30] sm:$0x1] %vm1829_vm13, %v1819_v9  ;;  %1835 = vst.msk [vmem:[%s4391_s29 + $0x50] sm:$0x1] %vm1829_vm13, %v4400_v7  ;;  %v3675_v17 = vrot.slane %v3653_v11, %v4358_v44  ;;  %v4432_v18 = vrot.slane %v3652_v0, %v4358_v44  ;;  %v3654_v19 = vcombine.high %v3652_v0, %v3652_v0 }
 0x1af   : > { %1836 = vst.msk [vmem:[%s4391_s29 + $0x60] sm:$0x1] %vm1829_vm13, %v4404_v8  ;;  %v4435_v20 = vrot.slane %v1795_v59, %v4368_v54  ;;  %v2757_v21 = vcombine.high %v4380_v62, %v4380_v62  ;;  %v2579_v22 = vrot.slane %v2565_v16, %v4358_v44  ;;  %v3698_v24 = vrot.slane %v3683_v12, %v4368_v54 }
 0x1b0   : > { %v3694_v23 = vrot.slane %v3675_v17, %v4368_v54  ;;  %v3685_v25 = vcombine.high %v3675_v17, %v3675_v17  ;;  %v4443_v26 = vrot.slane %v2572_v15, %v4358_v44  ;;  %v4446_v27 = vrot.slane %v2756_v13, %v4358_v44 }
 0x1b1   : > { %v2786_v28 = vcombine.high %v4425_v14, %v4425_v14  ;;  %v4451_v29 = vrot.slane %v1809_v4, %v4368_v54  ;;  %v4454_v30 = vrot.slane %v2579_v22, %v4358_v44  ;;  %3723 = vrot.lane.b32.xlu0 %v3698_v24, %s4135_s30  ;;  %v3706_v31 = vrot.slane %v4432_v18, %v4368_v54 }
 0x1b2   : > { %3721 = vrot.lane.b32.xlu1 %v3694_v23, %s4135_s30  ;;  %v4461_v32 = vrot.slane %v3654_v19, %v4358_v44  ;;  %v3461_v33 = vcombine.low %v4365_v53, %v4362_v50  ;;  %v3702_v34 = vrot.slane %v3685_v25, %v4368_v54  ;;  %v3684_v35 = vcombine.high %v4432_v18, %v4432_v18 }
 0x1b3   : > { %v2581_v37 = vcombine.high %v2579_v22, %v2579_v22  ;;  %v3462_v38 = vcombine.high %v4365_v53, %v4362_v50  ;;  %v4472_v40 = vrot.slane %v1819_v9, %v4368_v54  ;;  %v4476_v41 = vrot.slane %v4400_v7, %v4368_v54 }
 0x1b4   : > { %v3469_v39 = vrot.slane %v3461_v33, %v4358_v44  ;;  %v2617_v42 = vrot.slane %v4443_v26, %v4368_v54  ;;  %v2649_v45 = vrot.slane %v4454_v30, %v4368_v54  ;;  %v4484_v46 = vrot.slane %v2786_v28, %v4368_v54 }
 0x1b5   : > { %v3476_v43 = vrot.slane %v3462_v38, %v4358_v44  ;;  %v4488_v47 = vrot.slane %v4397_v6, %v4368_v54  ;;  %3727 = vrot.lane.b32.xlu0 %v3706_v31, %s4135_s30  ;;  %v3710_v48 = vrot.slane %v4461_v32, %v4368_v54  ;;  %v2580_v51 = vcombine.high %v2572_v15, %v2572_v15 }
 0x1b6   : > { %3725 = vrot.lane.b32.xlu1 %v3702_v34, %s4135_s30  ;;  %v4498_v50 = vrot.slane %v3469_v39, %v4358_v44  ;;  %v3477_v52 = vcombine.high %v3469_v39, %v3469_v39  ;;  %v4505_v55 = vcombine.high %v4443_v26, %v4443_v26  ;;  %v4508_v56 = vrot.slane %v2581_v37, %v4358_v44 }
 0x1b7   : > { %v4501_v53 = vrot.slane %v3476_v43, %v4358_v44  ;;  %v3478_v57 = vcombine.high %v3476_v43, %v3476_v43  ;;  %v4511_v58 = vrot.slane %v2580_v51, %v4358_v44  ;;  %v4515_v36 = vcombine.high %v4454_v30, %v4454_v30 }
 0x1b8   : > { %v2788_v59 = vcombine.high %v4446_v27, %v4446_v27  ;;  %v3686_v60 = vcombine.high %v4461_v32, %v4461_v32  ;;  %v2637_v61 = vrot.slane %v4505_v55, %v4495_v49  ;;  %v2661_v62 = vrot.slane %v4508_v56, %v4495_v49 }
 0x1b9   : > { %v2785_v63 = vrot.slane %v2757_v21, %v4358_v44  ;;  %2044 = vrot.lane.b32.xlu0 %v4435_v20, %s4130_s11  ;;  %v2629_v1 = vrot.slane %v4511_v58, %v4495_v49  ;;  %v2669_v2 = vrot.slane %v4515_v36, %v4495_v49  ;;  %v3514_v10 = vrot.slane %v4498_v50, %v4368_v54 }
 0x1ba   : > { %3729 = vrot.lane.b32.xlu1 %v3710_v48, %s4135_s30  ;;  %v4534_v4 = vrot.slane %v2788_v59, %v4368_v54  ;;  %v3546_v11 = vrot.slane %v4501_v53, %v4368_v54  ;;  %v4545_v12 = vrot.slane %v4404_v8, %v4368_v54  ;;  %v4548_v0 = vrot.slane %v3477_v52, %v4358_v44 }
 0x1bb   : > { %v4537_v9 = vrot.slane %v2785_v63, %v4368_v54  ;;  %v4552_v13 = vcombine.high %v4498_v50, %v4498_v50  ;;  %v2625_v15 = vrot.slane %v4511_v58, %v4368_v54  ;;  %v4557_v16 = vrot.slane %v3478_v57, %v4358_v44 }
 0x1bc   : > { %v2633_v17 = vrot.slane %v4505_v55, %v4368_v54  ;;  %v4563_v8 = vcombine.high %v4501_v53, %v4501_v53  ;;  %v2657_v19 = vrot.slane %v4508_v56, %v4368_v54  ;;  %v2665_v21 = vrot.slane %v4515_v36, %v4368_v54 }
 0x1bd   : > { %2163 = vrot.lane.b32.xlu0 %v4435_v20, %s4136_s4  ;;  %v3526_v44 = vrot.slane %v4548_v0, %v4495_v49  ;;  %v3534_v22 = vrot.slane %v4552_v13, %v4495_v49  ;;  %v3558_v23 = vrot.slane %v4557_v16, %v4495_v49  ;;  %v2787_v25 = vcombine.high %v4397_v6, %v4397_v6 }
 0x1be   : > { %1925 = vrot.lane.b32.xlu1 %v4435_v20, %s4127_s8  ;;  %v3566_v24 = vrot.slane %v4563_v8, %v4495_v49  ;;  %v1820_v28 = vcombine.high %v4400_v7, %v4400_v7  ;;  %v3522_v31 = vrot.slane %v4548_v0, %v4368_v54  ;;  %v3530_v32 = vrot.slane %v4552_v13, %v4368_v54 }
 0x1bf   : > { %v4591_v33 = vcombine.high %v4511_v58, %v4511_v58  ;;  %v3554_v34 = vrot.slane %v4557_v16, %v4368_v54  ;;  %v4597_v37 = vcombine.high %v4508_v56, %v4508_v56  ;;  %v4600_v6 = vrot.slane %v2787_v25, %v4368_v54 }
 0x1c0   : > { %v4603_v7 = vrot.slane %v1820_v28, %v4368_v54  ;;  %1837 = vst.msk [vmem:[%s4391_s29 + $0x70] sm:$0x1] %vm1829_vm13, %v1820_v28  ;;  %v2789_v39 = vcombine.high %v2785_v63, %v2785_v63  ;;  %v4626_v59 = vcombine.high %v4548_v0, %v4548_v0  ;;  %v4630_v63 = vcombine.high %v4557_v16, %v4557_v16 }
 0x1c1   : > { %2282 = vrot.lane.b32.xlu0 %v4435_v20, %s4137_s5  ;;  %v2645_v43 = vrot.slane %v4591_v33, %v4495_v49  ;;  %v2677_v48 = vrot.slane %v4597_v37, %v4495_v49  ;;  %v4636_v25 = vrot.slane %v3684_v35, %v4368_v54  ;;  %v4639_v28 = vrot.slane %v3686_v60, %v4368_v54 }
 0x1c2   : > { %1927 = vrot.lane.b32.xlu1 %v4451_v29, %s4127_s8  ;;  %v4620_v52 = vrot.slane %v2789_v39, %v4368_v54  ;;  %v3538_v39 = vrot.slane %v4626_v59, %v4368_v54  ;;  %v3570_v57 = vrot.slane %v4630_v63, %v4368_v54  ;;  %v3542_v51 = vrot.slane %v4626_v59, %v4495_v49 }
 0x1c3   : > { %v3574_v38 = vrot.slane %v4630_v63, %v4495_v49  ;;  %v2793_v18 = vrot.slane %v4425_v14, %v4368_v54  ;;  %v2621_v14 = vrot.slane %v4443_v26, %v4495_v49  ;;  %v1904_v35 = vrot.slane %v4389_v5, %v4368_v54 }
 0x1c4   : > { %v1912_v60 = vrot.slane %v4386_v3, %v4368_v54  ;;  %v3518_v5 = vrot.slane %v4498_v50, %v4495_v49  ;;  %v3550_v3 = vrot.slane %v4501_v53, %v4495_v49 }
 0x1c5   : > { %2401 = vrot.lane.b32.xlu0 %v4435_v20, %s4138_s6 }
 0x1c6   : > { %2046 = vrot.lane.b32.xlu1 %v4451_v29, %s4130_s11 }
 0x1c9   : > { %2520 = vrot.lane.b32.xlu0 %v4435_v20, %s4139_s7  ;;  %v2653_v20 = vrot.slane %v4454_v30, %v4495_v49 }
 0x1ca   : > { %2165 = vrot.lane.b32.xlu1 %v4451_v29, %s4136_s4 }
 0x1cd   : > { %2822 = vrot.lane.b32.xlu0 %v2793_v18, %s4140_s9 }
 0x1ce   : > { %2284 = vrot.lane.b32.xlu1 %v4451_v29, %s4137_s5 }
 0x1d1   : > { %2941 = vrot.lane.b32.xlu0 %v2793_v18, %s4141_s10 }
 0x1d2   : > { %2403 = vrot.lane.b32.xlu1 %v4451_v29, %s4138_s6 }
 0x1d5   : > { %3060 = vrot.lane.b32.xlu0 %v2793_v18, %s4142_s18 }
 0x1d6   : > { %2522 = vrot.lane.b32.xlu1 %v4451_v29, %s4139_s7  ;;  %v2797_v29 = vrot.slane %v4446_v27, %v4368_v54 }
 0x1d9   : > { %3179 = vrot.lane.b32.xlu0 %v2793_v18, %s4144_s21 }
 0x1da   : > { %2680 = vrot.lane.b32.xlu1 %v2621_v14, %s4143_s19 }
 0x1dd   : > { %3298 = vrot.lane.b32.xlu0 %v2793_v18, %s4145_s23 }
 0x1de   : > { %2696 = vrot.lane.b32.xlu1 %v2653_v20, %s4143_s19 }
 0x1e1   : > { %3417 = vrot.lane.b32.xlu0 %v2793_v18, %s4146_s26 }
 0x1e2   : > { %2824 = vrot.lane.b32.xlu1 %v2797_v29, %s4140_s9 }
 0x1e5   : > { %1929 = vrot.lane.b32.xlu0 %v1904_v35, %s4127_s8 }
 0x1e6   : > { %2943 = vrot.lane.b32.xlu1 %v2797_v29, %s4141_s10 }
 0x1e9   : > { %1933 = vrot.lane.b32.xlu0 %v1912_v60, %s4127_s8 }
 0x1ea   : > { %3062 = vrot.lane.b32.xlu1 %v2797_v29, %s4142_s18 }
 0x1ed   : > { %2048 = vrot.lane.b32.xlu0 %v1904_v35, %s4130_s11 }
 0x1ee   : > { %3181 = vrot.lane.b32.xlu1 %v2797_v29, %s4144_s21 }
 0x1f1   : > { %2052 = vrot.lane.b32.xlu0 %v1912_v60, %s4130_s11 }
 0x1f2   : > { %3300 = vrot.lane.b32.xlu1 %v2797_v29, %s4145_s23 }
 0x1f5   : > { %2167 = vrot.lane.b32.xlu0 %v1904_v35, %s4136_s4 }
 0x1f6   : > { %3419 = vrot.lane.b32.xlu1 %v2797_v29, %s4146_s26 }
 0x1f9   : > { %2171 = vrot.lane.b32.xlu0 %v1912_v60, %s4136_s4 }
 0x1fa   : > { %3577 = vrot.lane.b32.xlu1 %v3518_v5, %s4147_s28 }
 0x1fd   : > { %2286 = vrot.lane.b32.xlu0 %v1904_v35, %s4137_s5 }
 0x1fe   : > { %3593 = vrot.lane.b32.xlu1 %v3550_v3, %s4147_s28 }
 0x201   : > { %2290 = vrot.lane.b32.xlu0 %v1912_v60, %s4137_s5 }
 0x202   : > { %1931 = vrot.lane.b32.xlu1 %v4472_v40, %s4127_s8 }
 0x205   : > { %2405 = vrot.lane.b32.xlu0 %v1904_v35, %s4138_s6 }
 0x206   : > { %1935 = vrot.lane.b32.xlu1 %v4476_v41, %s4127_s8 }
 0x209   : > { %2409 = vrot.lane.b32.xlu0 %v1912_v60, %s4138_s6 }
 0x20a   : > { %2050 = vrot.lane.b32.xlu1 %v4472_v40, %s4130_s11 }
 0x20d   : > { %2524 = vrot.lane.b32.xlu0 %v1904_v35, %s4139_s7 }
 0x20e   : > { %2054 = vrot.lane.b32.xlu1 %v4476_v41, %s4130_s11 }
 0x211   : > { %2528 = vrot.lane.b32.xlu0 %v1912_v60, %s4139_s7 }
 0x212   : > { %2169 = vrot.lane.b32.xlu1 %v4472_v40, %s4136_s4 }
 0x215   : > { %2678 = vrot.lane.b32.xlu0 %v2617_v42, %s4143_s19 }
 0x216   : > { %2173 = vrot.lane.b32.xlu1 %v4476_v41, %s4136_s4 }
 0x219   : > { %2694 = vrot.lane.b32.xlu0 %v2649_v45, %s4143_s19 }
 0x21a   : > { %2288 = vrot.lane.b32.xlu1 %v4472_v40, %s4137_s5 }
 0x21d   : > { %2826 = vrot.lane.b32.xlu0 %v4484_v46, %s4140_s9 }
 0x21e   : > { %2292 = vrot.lane.b32.xlu1 %v4476_v41, %s4137_s5 }
 0x21f   : > { %v3720_v27 = vpop.permute.xlu0 %3719 }
 0x220   : > { %3743 = vst.msk [vmem:[%s4391_s29 + $0xf] sm:$0x1] %vm1829_vm13, %v3720_v27 }
 0x221   : > { %2830 = vrot.lane.b32.xlu0 %v4488_v47, %s4140_s9 }
 0x222   : > { %2407 = vrot.lane.b32.xlu1 %v4472_v40, %s4138_s6 }
 0x223   : > { %v3724_v30 = vpop.permute.xlu0 %3723 }
 0x224   : > { %v3722_v26 = vpop.permute.xlu1 %3721  ;;  %3745 = vst.msk [vmem:[%s4391_s29 + $0x2f] sm:$0x1] %vm1829_vm13, %v3724_v30 }
 0x225   : > { %3744 = vst.msk [vmem:[%s4391_s29 + $0x1f] sm:$0x1] %vm1829_vm13, %v3722_v26  ;;  %2945 = vrot.lane.b32.xlu0 %v4484_v46, %s4141_s10 }
 0x226   : > { %2411 = vrot.lane.b32.xlu1 %v4476_v41, %s4138_s6 }
 0x227   : > { %v3728_v45 = vpop.permute.xlu0 %3727 }
 0x228   : > { %v3726_v42 = vpop.permute.xlu1 %3725  ;;  %3747 = vst.msk [vmem:[%s4391_s29 + $0x4f] sm:$0x1] %vm1829_vm13, %v3728_v45 }
 0x229   : > { %3746 = vst.msk [vmem:[%s4391_s29 + $0x3f] sm:$0x1] %vm1829_vm13, %v3726_v42  ;;  %2949 = vrot.lane.b32.xlu0 %v4488_v47, %s4141_s10 }
 0x22a   : > { %2526 = vrot.lane.b32.xlu1 %v4472_v40, %s4139_s7 }
 0x22b   : > { %v2045_v14 = vpop.permute.xlu0 %2044 }
 0x22c   : > { %v3730_v18 = vpop.permute.xlu1 %3729  ;;  %2068 = vst.msk [vmem:[%s4391_s29 + $0x2] sm:$0x1] %vm1829_vm13, %v2045_v14 }
 0x22d   : > { %3748 = vst.msk [vmem:[%s4391_s29 + $0x5f] sm:$0x1] %vm1829_vm13, %v3730_v18  ;;  %3064 = vrot.lane.b32.xlu0 %v4484_v46, %s4142_s18 }
 0x22e   : > { %2530 = vrot.lane.b32.xlu1 %v4476_v41, %s4139_s7 }
 0x22f   : > { %v2164_v20 = vpop.permute.xlu0 %2163 }
 0x230   : > { %v1926_v40 = vpop.permute.xlu1 %1925  ;;  %2187 = vst.msk [vmem:[%s4391_s29 + $0x3] sm:$0x1] %vm1829_vm13, %v2164_v20 }
 0x231   : > { %1949 = vst.msk [vmem:[%s4391_s29 + $0x1] sm:$0x1] %vm1829_vm13, %v1926_v40  ;;  %3068 = vrot.lane.b32.xlu0 %v4488_v47, %s4142_s18 }
 0x232   : > { %2684 = vrot.lane.b32.xlu1 %v2629_v1, %s4143_s19 }
 0x233   : > { %v2283_v29 = vpop.permute.xlu0 %2282 }
 0x234   : > { %v1928_v41 = vpop.permute.xlu1 %1927  ;;  %2306 = vst.msk [vmem:[%s4391_s29 + $0x4] sm:$0x1] %vm1829_vm13, %v2283_v29 }
 0x235   : > { %1950 = vst.msk [vmem:[%s4391_s29 + $0x11] sm:$0x1] %vm1829_vm13, %v1928_v41  ;;  %3183 = vrot.lane.b32.xlu0 %v4484_v46, %s4144_s21 }
 0x236   : > { %2688 = vrot.lane.b32.xlu1 %v2637_v61, %s4143_s19 }
 0x237   : > { %v2402_v35 = vpop.permute.xlu0 %2401 }
 0x238   : > { %v2047_v1 = vpop.permute.xlu1 %2046  ;;  %2425 = vst.msk [vmem:[%s4391_s29 + $0x5] sm:$0x1] %vm1829_vm13, %v2402_v35 }
 0x239   : > { %2069 = vst.msk [vmem:[%s4391_s29 + $0x12] sm:$0x1] %vm1829_vm13, %v2047_v1  ;;  %3187 = vrot.lane.b32.xlu0 %v4488_v47, %s4144_s21 }
 0x23a   : > { %2700 = vrot.lane.b32.xlu1 %v2661_v62, %s4143_s19 }
 0x23b   : > { %v2521_v60 = vpop.permute.xlu0 %2520 }
 0x23c   : > { %v2166_v61 = vpop.permute.xlu1 %2165  ;;  %2544 = vst.msk [vmem:[%s4391_s29 + $0x6] sm:$0x1] %vm1829_vm13, %v2521_v60 }
 0x23d   : > { %2188 = vst.msk [vmem:[%s4391_s29 + $0x13] sm:$0x1] %vm1829_vm13, %v2166_v61  ;;  %3302 = vrot.lane.b32.xlu0 %v4484_v46, %s4145_s23 }
 0x23e   : > { %2704 = vrot.lane.b32.xlu1 %v2669_v2, %s4143_s19 }
 0x23f   : > { %v2823_v5 = vpop.permute.xlu0 %2822 }
 0x240   : > { %v2285_v62 = vpop.permute.xlu1 %2284  ;;  %2846 = vst.msk [vmem:[%s4391_s29 + $0x8] sm:$0x1] %vm1829_vm13, %v2823_v5 }
 0x241   : > { %2307 = vst.msk [vmem:[%s4391_s29 + $0x14] sm:$0x1] %vm1829_vm13, %v2285_v62  ;;  %3306 = vrot.lane.b32.xlu0 %v4488_v47, %s4145_s23 }
 0x242   : > { %2828 = vrot.lane.b32.xlu1 %v4534_v4, %s4140_s9 }
 0x243   : > { %v2942_v2 = vpop.permute.xlu0 %2941 }
 0x244   : > { %v2404_v3 = vpop.permute.xlu1 %2403  ;;  %2965 = vst.msk [vmem:[%s4391_s29 + $0x9] sm:$0x1] %vm1829_vm13, %v2942_v2 }
 0x245   : > { %2426 = vst.msk [vmem:[%s4391_s29 + $0x15] sm:$0x1] %vm1829_vm13, %v2404_v3  ;;  %3575 = vrot.lane.b32.xlu0 %v3514_v10, %s4147_s28 }
 0x246   : > { %2832 = vrot.lane.b32.xlu1 %v4537_v9, %s4140_s9 }
 0x247   : > { %v3061_v26 = vpop.permute.xlu0 %3060 }
 0x248   : > { %v2523_v27 = vpop.permute.xlu1 %2522  ;;  %3084 = vst.msk [vmem:[%s4391_s29 + $0xa] sm:$0x1] %vm1829_vm13, %v3061_v26 }
 0x249   : > { %2545 = vst.msk [vmem:[%s4391_s29 + $0x16] sm:$0x1] %vm1829_vm13, %v2523_v27  ;;  %3591 = vrot.lane.b32.xlu0 %v3546_v11, %s4147_s28 }
 0x24a   : > { %2947 = vrot.lane.b32.xlu1 %v4534_v4, %s4141_s10 }
 0x24b   : > { %v3180_v50 = vpop.permute.xlu0 %3179 }
 0x24c   : > { %v4831_v30 = vpop.permute.xlu1 %2680  ;;  %3203 = vst.msk [vmem:[%s4391_s29 + $0xb] sm:$0x1] %vm1829_vm13, %v3180_v50 }
 0x24d   : > { %3421 = vrot.lane.b32.xlu0 %v4484_v46, %s4146_s26 }
 0x24e   : > { %2951 = vrot.lane.b32.xlu1 %v4537_v9, %s4141_s10 }
 0x24f   : > { %v3299_v42 = vpop.permute.xlu0 %3298 }
 0x250   : > { %v4839_v10 = vpop.permute.xlu1 %2696  ;;  %3322 = vst.msk [vmem:[%s4391_s29 + $0xc] sm:$0x1] %vm1829_vm13, %v3299_v42 }
 0x251   : > { %3425 = vrot.lane.b32.xlu0 %v4488_v47, %s4146_s26 }
 0x252   : > { %3066 = vrot.lane.b32.xlu1 %v4534_v4, %s4142_s18 }
 0x253   : > { %v3418_v11 = vpop.permute.xlu0 %3417 }
 0x254   : > { %v2825_v53 = vpop.permute.xlu1 %2824  ;;  %3441 = vst.msk [vmem:[%s4391_s29 + $0xd] sm:$0x1] %vm1829_vm13, %v3418_v11 }
 0x255   : > { %2847 = vst.msk [vmem:[%s4391_s29 + $0x18] sm:$0x1] %vm1829_vm13, %v2825_v53  ;;  %1937 = vrot.lane.b32.xlu0 %v4545_v12, %s4127_s8 }
 0x256   : > { %3070 = vrot.lane.b32.xlu1 %v4537_v9, %s4142_s18 }
 0x257   : > { %v1930_v45 = vpop.permute.xlu0 %1929 }
 0x258   : > { %v2944_v46 = vpop.permute.xlu1 %2943  ;;  %1951 = vst.msk [vmem:[%s4391_s29 + $0x21] sm:$0x1] %vm1829_vm13, %v1930_v45 }
 0x259   : > { %2966 = vst.msk [vmem:[%s4391_s29 + $0x19] sm:$0x1] %vm1829_vm13, %v2944_v46  ;;  %2056 = vrot.lane.b32.xlu0 %v4545_v12, %s4130_s11 }
 0x25a   : > { %3185 = vrot.lane.b32.xlu1 %v4534_v4, %s4144_s21 }
 0x25b   : > { %v1934_v18 = vpop.permute.xlu0 %1933 }
 0x25c   : > { %v3063_v47 = vpop.permute.xlu1 %3062  ;;  %1953 = vst.msk [vmem:[%s4391_s29 + $0x41] sm:$0x1] %vm1829_vm13, %v1934_v18 }
 0x25d   : > { %3085 = vst.msk [vmem:[%s4391_s29 + $0x1a] sm:$0x1] %vm1829_vm13, %v3063_v47  ;;  %2175 = vrot.lane.b32.xlu0 %v4545_v12, %s4136_s4 }
 0x25e   : > { %3189 = vrot.lane.b32.xlu1 %v4537_v9, %s4144_s21 }
 0x25f   : > { %v2049_v40 = vpop.permute.xlu0 %2048 }
 0x260   : > { %v3182_v14 = vpop.permute.xlu1 %3181  ;;  %2070 = vst.msk [vmem:[%s4391_s29 + $0x22] sm:$0x1] %vm1829_vm13, %v2049_v40 }
 0x261   : > { %3204 = vst.msk [vmem:[%s4391_s29 + $0x1b] sm:$0x1] %vm1829_vm13, %v3182_v14  ;;  %2294 = vrot.lane.b32.xlu0 %v4545_v12, %s4137_s5 }
 0x262   : > { %3304 = vrot.lane.b32.xlu1 %v4534_v4, %s4145_s23 }
 0x263   : > { %v2053_v41 = vpop.permute.xlu0 %2052 }
 0x264   : > { %v3301_v20 = vpop.permute.xlu1 %3300  ;;  %2072 = vst.msk [vmem:[%s4391_s29 + $0x42] sm:$0x1] %vm1829_vm13, %v2053_v41 }
 0x265   : > { %3323 = vst.msk [vmem:[%s4391_s29 + $0x1c] sm:$0x1] %vm1829_vm13, %v3301_v20  ;;  %2413 = vrot.lane.b32.xlu0 %v4545_v12, %s4138_s6 }
 0x266   : > { %3308 = vrot.lane.b32.xlu1 %v4537_v9, %s4145_s23 }
 0x267   : > { %v2168_v1 = vpop.permute.xlu0 %2167 }
 0x268   : > { %v3420_v29 = vpop.permute.xlu1 %3419  ;;  %2189 = vst.msk [vmem:[%s4391_s29 + $0x23] sm:$0x1] %vm1829_vm13, %v2168_v1 }
 0x269   : > { %3442 = vst.msk [vmem:[%s4391_s29 + $0x1d] sm:$0x1] %vm1829_vm13, %v3420_v29  ;;  %2532 = vrot.lane.b32.xlu0 %v4545_v12, %s4139_s7 }
 0x26a   : > { %3581 = vrot.lane.b32.xlu1 %v3526_v44, %s4147_s28 }
 0x26b   : > { %v2172_v61 = vpop.permute.xlu0 %2171 }
 0x26c   : > { %v4897_v35 = vpop.permute.xlu1 %3577  ;;  %2191 = vst.msk [vmem:[%s4391_s29 + $0x43] sm:$0x1] %vm1829_vm13, %v2172_v61 }
 0x26d   : > { %2682 = vrot.lane.b32.xlu0 %v2625_v15, %s4143_s19 }
 0x26e   : > { %3585 = vrot.lane.b32.xlu1 %v3534_v22, %s4147_s28 }
 0x26f   : > { %v2287_v12 = vpop.permute.xlu0 %2286 }
 0x270   : > { %v4909_v44 = vpop.permute.xlu1 %3593  ;;  %2308 = vst.msk [vmem:[%s4391_s29 + $0x24] sm:$0x1] %vm1829_vm13, %v2287_v12 }
 0x271   : > { %2686 = vrot.lane.b32.xlu0 %v2633_v17, %s4143_s19 }
 0x272   : > { %3597 = vrot.lane.b32.xlu1 %v3558_v23, %s4147_s28 }
 0x273   : > { %v2291_v22 = vpop.permute.xlu0 %2290 }
 0x274   : > { %v1932_v58 = vpop.permute.xlu1 %1931  ;;  %2310 = vst.msk [vmem:[%s4391_s29 + $0x44] sm:$0x1] %vm1829_vm13, %v2291_v22 }
 0x275   : > { %1952 = vst.msk [vmem:[%s4391_s29 + $0x31] sm:$0x1] %vm1829_vm13, %v1932_v58  ;;  %2698 = vrot.lane.b32.xlu0 %v2657_v19, %s4143_s19 }
 0x276   : > { %3601 = vrot.lane.b32.xlu1 %v3566_v24, %s4147_s28 }
 0x277   : > { %v2406_v15 = vpop.permute.xlu0 %2405 }
 0x278   : > { %v1936_v55 = vpop.permute.xlu1 %1935  ;;  %2427 = vst.msk [vmem:[%s4391_s29 + $0x25] sm:$0x1] %vm1829_vm13, %v2406_v15 }
 0x279   : > { %1954 = vst.msk [vmem:[%s4391_s29 + $0x51] sm:$0x1] %vm1829_vm13, %v1936_v55  ;;  %2702 = vrot.lane.b32.xlu0 %v2665_v21, %s4143_s19 }
 0x27a   : > { %3423 = vrot.lane.b32.xlu1 %v4534_v4, %s4146_s26 }
 0x27b   : > { %v2410_v17 = vpop.permute.xlu0 %2409 }
 0x27c   : > { %v2051_v56 = vpop.permute.xlu1 %2050  ;;  %2429 = vst.msk [vmem:[%s4391_s29 + $0x45] sm:$0x1] %vm1829_vm13, %v2410_v17 }
 0x27d   : > { %2071 = vst.msk [vmem:[%s4391_s29 + $0x32] sm:$0x1] %vm1829_vm13, %v2051_v56  ;;  %2834 = vrot.lane.b32.xlu0 %v4600_v6, %s4140_s9 }
 0x27e   : > { %3427 = vrot.lane.b32.xlu1 %v4537_v9, %s4146_s26 }
 0x27f   : > { %v2525_v19 = vpop.permute.xlu0 %2524 }
 0x280   : > { %v2055_v4 = vpop.permute.xlu1 %2054  ;;  %2546 = vst.msk [vmem:[%s4391_s29 + $0x26] sm:$0x1] %vm1829_vm13, %v2525_v19 }
 0x281   : > { %2073 = vst.msk [vmem:[%s4391_s29 + $0x52] sm:$0x1] %vm1829_vm13, %v2055_v4  ;;  %2953 = vrot.lane.b32.xlu0 %v4600_v6, %s4141_s10 }
 0x282   : > { %1939 = vrot.lane.b32.xlu1 %v4603_v7, %s4127_s8  ;;  %s3880_s8 = sshll.u32 %s4113_s15, 11 }
 0x283   : > { %v2529_v9 = vpop.permute.xlu0 %2528 }
 0x284   : > { %v2170_v36 = vpop.permute.xlu1 %2169  ;;  %2548 = vst.msk [vmem:[%s4391_s29 + $0x46] sm:$0x1] %vm1829_vm13, %v2529_v9 }
 0x285   : > { %2190 = vst.msk [vmem:[%s4391_s29 + $0x33] sm:$0x1] %vm1829_vm13, %v2170_v36  ;;  %3072 = vrot.lane.b32.xlu0 %v4600_v6, %s4142_s18 }
 0x286   : > { %2058 = vrot.lane.b32.xlu1 %v4603_v7, %s4130_s11  ;;  %s3767_s11 = sshll.u32 %s4391_s29, 4  ;;  %s5228_s11 = int_to_ptr.vmem [resolvable:$true] %s3767_s11 }
 0x287   : > { %v2679_v23 = vpop.permute.xlu0 %2678  ;;  %s4043_s15 = scalar_lea.vmem %s5228_s11, 2048 }
 0x288   : > { %v2174_v21 = vpop.permute.xlu1 %2173  ;;  %v2711_v24 = vsel %vm2710_vm14, %v2679_v23, %v4831_v30  ;;  %p4044_p12 = scmp.ne.s32.totalorder %s5228_s11, %s4043_s15 }
 0x289   : > { %2192 = vst.msk [vmem:[%s4391_s29 + $0x53] sm:$0x1] %vm1829_vm13, %v2174_v21  ;;  %2727 = vst.msk [vmem:[%s4391_s29 + $0x7] sm:$0x1] %vm1829_vm13, %v2711_v24  ;;  %3191 = vrot.lane.b32.xlu0 %v4600_v6, %s4144_s21 }
 0x28a   : > { %2177 = vrot.lane.b32.xlu1 %v4603_v7, %s4136_s4  ;;  %p4045_p13 = pnand %p4044_p12, %p4211_p4 }
 0x28b   : > { %v2695_v62 = vpop.permute.xlu0 %2694 }
 0x28c   : > { %v2289_v60 = vpop.permute.xlu1 %2288  ;;  %v2715_v5 = vsel %vm2710_vm14, %v2695_v62, %v4839_v10  ;;  %p4046_p0 = pneg %p4045_p13 }
 0x28d   : > { %2309 = vst.msk [vmem:[%s4391_s29 + $0x34] sm:$0x1] %vm1829_vm13, %v2289_v60  ;;  %2731 = vst.msk [vmem:[%s4391_s29 + $0x47] sm:$0x1] %vm1829_vm13, %v2715_v5  ;;  %3310 = vrot.lane.b32.xlu0 %v4600_v6, %s4145_s23 }
 0x28e   : > { %2296 = vrot.lane.b32.xlu1 %v4603_v7, %s4137_s5  ;;  %s5226_s5 = scalar_lea.hbm %s5283_s3, %s3880_s8 }
 0x28f   : > { %v2827_v2 = vpop.permute.xlu0 %2826 }
 0x290   : > { %v2293_v3 = vpop.permute.xlu1 %2292  ;;  %2848 = vst.msk [vmem:[%s4391_s29 + $0x28] sm:$0x1] %vm1829_vm13, %v2827_v2 }
 0x291   : > { %2311 = vst.msk [vmem:[%s4391_s29 + $0x54] sm:$0x1] %vm1829_vm13, %v2293_v3  ;;  %3579 = vrot.lane.b32.xlu0 %v3522_v31, %s4147_s28 }
 0x292   : > { %2415 = vrot.lane.b32.xlu1 %v4603_v7, %s4138_s6  ;;  %s5234_s6 = scalar_lea.sflag [#allocation4], %s175_s27 }
 0x293   : > { %v2831_v26 = vpop.permute.xlu0 %2830 }
 0x294   : > { %v2408_v27 = vpop.permute.xlu1 %2407  ;;  %2850 = vst.msk [vmem:[%s4391_s29 + $0x48] sm:$0x1] %vm1829_vm13, %v2831_v26 }
 0x295   : > { %2428 = vst.msk [vmem:[%s4391_s29 + $0x35] sm:$0x1] %vm1829_vm13, %v2408_v27  ;;  %3583 = vrot.lane.b32.xlu0 %v3530_v32, %s4147_s28  ;;  %v5286_v32 = vrot.slane %v4563_v8, %v4368_v54  ;;  %v5287_v8 = vrot.slane %v4591_v33, %v4368_v54 }
 0x296   : > { %2534 = vrot.lane.b32.xlu1 %v4603_v7, %s4139_s7  ;;  %s4148_s7 = smov [#allocation3]  }
 0x297   : > { %v2946_v30 = vpop.permute.xlu0 %2945 }
 0x298   : > { %v2412_v0 = vpop.permute.xlu1 %2411  ;;  %2967 = vst.msk [vmem:[%s4391_s29 + $0x29] sm:$0x1] %vm1829_vm13, %v2946_v30 }
 0x299   : > { %2430 = vst.msk [vmem:[%s4391_s29 + $0x55] sm:$0x1] %vm1829_vm13, %v2412_v0  ;;  %3595 = vrot.lane.b32.xlu0 %v3554_v34, %s4147_s28 }
 0x29a   : > { %2692 = vrot.lane.b32.xlu1 %v2645_v43, %s4143_s19 }
 0x29b   : > { %v2950_v31 = vpop.permute.xlu0 %2949 }
 0x29c   : > { %v2527_v13 = vpop.permute.xlu1 %2526  ;;  %2969 = vst.msk [vmem:[%s4391_s29 + $0x49] sm:$0x1] %vm1829_vm13, %v2950_v31 }
 0x29d   : > { %2547 = vst.msk [vmem:[%s4391_s29 + $0x36] sm:$0x1] %vm1829_vm13, %v2527_v13  ;;  %3599 = vrot.lane.b32.xlu0 %v5286_v32, %s4147_s28 }
 0x29e   : > { %2708 = vrot.lane.b32.xlu1 %v2677_v48, %s4143_s19 }
 0x29f   : > { %v3065_v7 = vpop.permute.xlu0 %3064 }
 0x2a0   : > { %v2531_v16 = vpop.permute.xlu1 %2530  ;;  %3086 = vst.msk [vmem:[%s4391_s29 + $0x2a] sm:$0x1] %vm1829_vm13, %v3065_v7 }
 0x2a1   : > { %2549 = vst.msk [vmem:[%s4391_s29 + $0x56] sm:$0x1] %vm1829_vm13, %v2531_v16  ;;  %3429 = vrot.lane.b32.xlu0 %v4600_v6, %s4146_s26  ;;  %v5288_v6 = vrot.slane %v4597_v37, %v4368_v54 }
 0x2a2   : > { %2836 = vrot.lane.b32.xlu1 %v4620_v52, %s4140_s9  ;;  %s4047_s9 = sshll.u32 %s4148_s7, 4  ;;  %s4048_s9 = int_to_ptr.vmem [resolvable:$false] %s4047_s9 }
 0x2a3   : > { %v3069_v43 = vpop.permute.xlu0 %3068  ;;  %p4050_p1 = scmp.lt.s32.totalorder %s5228_s11, %s4048_s9 }
 0x2a4   : > { %v5039_v34 = vpop.permute.xlu1 %2684  ;;  %3088 = vst.msk [vmem:[%s4391_s29 + $0x4a] sm:$0x1] %vm1829_vm13, %v3069_v43 }
 0x2a5   : > { %2690 = vrot.lane.b32.xlu0 %v5287_v8, %s4143_s19 }
 0x2a6   : > { %2955 = vrot.lane.b32.xlu1 %v4620_v52, %s4141_s10  ;;  %s4049_s10 = scalar_lea.vmem %s4048_s9, 4096 }
 0x2a7   : > { %v3184_v50 = vpop.permute.xlu0 %3183  ;;  %p4051_p2 = scmp.lt.s32.totalorder %s4049_s10, %s4043_s15 }
 0x2a8   : > { %v5049_v48 = vpop.permute.xlu1 %2688  ;;  %3205 = vst.msk [vmem:[%s4391_s29 + $0x2b] sm:$0x1] %vm1829_vm13, %v3184_v50 }
 0x2a9   : > { %2706 = vrot.lane.b32.xlu0 %v5288_v6, %s4143_s19  ;;  %p4052_p3 = por %p4051_p2, %p4050_p1 }
 0x2aa   : > { %3074 = vrot.lane.b32.xlu1 %v4620_v52, %s4142_s18 }
 0x2ab   : > { %v3188_v42 = vpop.permute.xlu0 %3187  ;;  %p4053_p5 = pnand %p4052_p3, %p4046_p0 }
 0x2ac   : > { %v5059_v10 = vpop.permute.xlu1 %2700  ;;  %3207 = vst.msk [vmem:[%s4391_s29 + $0x4b] sm:$0x1] %vm1829_vm13, %v3188_v42 }
 0x2ad   : > { %3587 = vrot.lane.b32.xlu0 %v3538_v39, %s4147_s28 }
 0x2ae   : > { %3193 = vrot.lane.b32.xlu1 %v4620_v52, %s4144_s21 }
 0x2af   : > { %v3303_v53 = vpop.permute.xlu0 %3302 }
 0x2b0   : > { %v5069_v33 = vpop.permute.xlu1 %2704  ;;  %3324 = vst.msk [vmem:[%s4391_s29 + $0x2c] sm:$0x1] %vm1829_vm13, %v3303_v53 }
 0x2b1   : > { %3603 = vrot.lane.b32.xlu0 %v3570_v57, %s4147_s28 }
 0x2b2   : > { %3312 = vrot.lane.b32.xlu1 %v4620_v52, %s4145_s23 }
 0x2b3   : > { %v3307_v11 = vpop.permute.xlu0 %3306 }
 0x2b4   : > { %v2829_v37 = vpop.permute.xlu1 %2828  ;;  %3326 = vst.msk [vmem:[%s4391_s29 + $0x4c] sm:$0x1] %vm1829_vm13, %v3307_v11 }
 0x2b5   : > { %2849 = vst.msk [vmem:[%s4391_s29 + $0x38] sm:$0x1] %vm1829_vm13, %v2829_v37  ;;  %3731 = vrot.lane.b32.xlu0 %v4636_v25, %s4135_s30 }
 0x2b6   : > { %3589 = vrot.lane.b32.xlu1 %v3542_v51, %s4147_s28 }
 0x2b7   : > { %v3576_v57 = vpop.permute.xlu0 %3575 }
 0x2b8   : > { %v2833_v54 = vpop.permute.xlu1 %2832  ;;  %v3608_v39 = vsel %vm3607_vm15, %v3576_v57, %v4897_v35 }
 0x2b9   : > { %2851 = vst.msk [vmem:[%s4391_s29 + $0x58] sm:$0x1] %vm1829_vm13, %v2833_v54  ;;  %3624 = vst.msk [vmem:[%s4391_s29 + $0xe] sm:$0x1] %vm1829_vm13, %v3608_v39 }
 0x2ba   : > { %3605 = vrot.lane.b32.xlu1 %v3574_v38, %s4147_s28 }
 0x2bb   : > { %v3592_v59 = vpop.permute.xlu0 %3591 }
 0x2bc   : > { %v2948_v51 = vpop.permute.xlu1 %2947  ;;  %v3612_v25 = vsel %vm3607_vm15, %v3592_v59, %v4909_v44 }
 0x2bd   : > { %2968 = vst.msk [vmem:[%s4391_s29 + $0x39] sm:$0x1] %vm1829_vm13, %v2948_v51  ;;  %3628 = vst.msk [vmem:[%s4391_s29 + $0x4e] sm:$0x1] %vm1829_vm13, %v3612_v25 }
 0x2be   : > { %3431 = vrot.lane.b32.xlu1 %v4620_v52, %s4146_s26 }
 0x2bf   : > { %v3422_v49 = vpop.permute.xlu0 %3421 }
 0x2c0   : > { %v2952_v46 = vpop.permute.xlu1 %2951  ;;  %3443 = vst.msk [vmem:[%s4391_s29 + $0x2d] sm:$0x1] %vm1829_vm13, %v3422_v49 }
 0x2c1   : > { %2970 = vst.msk [vmem:[%s4391_s29 + $0x59] sm:$0x1] %vm1829_vm13, %v2952_v46 }
 0x2c2   : > { %3733 = vrot.lane.b32.xlu1 %v4639_v28, %s4135_s30 }
 0x2c3   : > { %v3426_v63 = vpop.permute.xlu0 %3425 }
 0x2c4   : > { %v3067_v38 = vpop.permute.xlu1 %3066  ;;  %3445 = vst.msk [vmem:[%s4391_s29 + $0x4d] sm:$0x1] %vm1829_vm13, %v3426_v63 }
 0x2c5   : > { %3087 = vst.msk [vmem:[%s4391_s29 + $0x3a] sm:$0x1] %vm1829_vm13, %v3067_v38 }
 0x2c7   : > { %v1938_v45 = vpop.permute.xlu0 %1937 }
 0x2c8   : > { %v3071_v52 = vpop.permute.xlu1 %3070  ;;  %1955 = vst.msk [vmem:[%s4391_s29 + $0x61] sm:$0x1] %vm1829_vm13, %v1938_v45 }
 0x2c9   : > { %3089 = vst.msk [vmem:[%s4391_s29 + $0x5a] sm:$0x1] %vm1829_vm13, %v3071_v52 }
 0x2cb   : > { %v2057_v18 = vpop.permute.xlu0 %2056 }
 0x2cc   : > { %v3186_v47 = vpop.permute.xlu1 %3185  ;;  %2074 = vst.msk [vmem:[%s4391_s29 + $0x62] sm:$0x1] %vm1829_vm13, %v2057_v18 }
 0x2cd   : > { %3206 = vst.msk [vmem:[%s4391_s29 + $0x3b] sm:$0x1] %vm1829_vm13, %v3186_v47 }
 0x2cf   : > { %v2176_v14 = vpop.permute.xlu0 %2175 }
 0x2d0   : > { %v3190_v28 = vpop.permute.xlu1 %3189  ;;  %2193 = vst.msk [vmem:[%s4391_s29 + $0x63] sm:$0x1] %vm1829_vm13, %v2176_v14 }
 0x2d1   : > { %3208 = vst.msk [vmem:[%s4391_s29 + $0x5b] sm:$0x1] %vm1829_vm13, %v3190_v28 }
 0x2d3   : > { %v2295_v20 = vpop.permute.xlu0 %2294 }
 0x2d4   : > { %v3305_v40 = vpop.permute.xlu1 %3304  ;;  %2312 = vst.msk [vmem:[%s4391_s29 + $0x64] sm:$0x1] %vm1829_vm13, %v2295_v20 }
 0x2d5   : > { %3325 = vst.msk [vmem:[%s4391_s29 + $0x3c] sm:$0x1] %vm1829_vm13, %v3305_v40 }
 0x2d7   : > { %v2414_v29 = vpop.permute.xlu0 %2413 }
 0x2d8   : > { %v3309_v41 = vpop.permute.xlu1 %3308  ;;  %2431 = vst.msk [vmem:[%s4391_s29 + $0x65] sm:$0x1] %vm1829_vm13, %v2414_v29 }
 0x2d9   : > { %3327 = vst.msk [vmem:[%s4391_s29 + $0x5c] sm:$0x1] %vm1829_vm13, %v3309_v41 }
 0x2db   : > { %v2533_v35 = vpop.permute.xlu0 %2532 }
 0x2dc   : > { %v3582_v1 = vpop.permute.xlu1 %3581  ;;  %2550 = vst.msk [vmem:[%s4391_s29 + $0x66] sm:$0x1] %vm1829_vm13, %v2533_v35 }
 0x2df   : > { %v2683_v44 = vpop.permute.xlu0 %2682 }
 0x2e0   : > { %v3586_v61 = vpop.permute.xlu1 %3585  ;;  %v2712_v12 = vsel %vm2710_vm14, %v2683_v44, %v5039_v34 }
 0x2e1   : > { %2728 = vst.msk [vmem:[%s4391_s29 + $0x17] sm:$0x1] %vm1829_vm13, %v2712_v12 }
 0x2e3   : > { %v2687_v22 = vpop.permute.xlu0 %2686 }
 0x2e4   : > { %v3598_v58 = vpop.permute.xlu1 %3597  ;;  %v2713_v55 = vsel %vm2710_vm14, %v2687_v22, %v5049_v48 }
 0x2e5   : > { %2729 = vst.msk [vmem:[%s4391_s29 + $0x27] sm:$0x1] %vm1829_vm13, %v2713_v55 }
 0x2e7   : > { %v2699_v56 = vpop.permute.xlu0 %2698 }
 0x2e8   : > { %v3602_v15 = vpop.permute.xlu1 %3601  ;;  %v2716_v17 = vsel %vm2710_vm14, %v2699_v56, %v5059_v10 }
 0x2e9   : > { %2732 = vst.msk [vmem:[%s4391_s29 + $0x57] sm:$0x1] %vm1829_vm13, %v2716_v17 }
 0x2eb   : > { %v2703_v19 = vpop.permute.xlu0 %2702 }
 0x2ec   : > { %v3424_v4 = vpop.permute.xlu1 %3423  ;;  %v2717_v36 = vsel %vm2710_vm14, %v2703_v19, %v5069_v33 }
 0x2ed   : > { %3444 = vst.msk [vmem:[%s4391_s29 + $0x3d] sm:$0x1] %vm1829_vm13, %v3424_v4  ;;  %2733 = vst.msk [vmem:[%s4391_s29 + $0x67] sm:$0x1] %vm1829_vm13, %v2717_v36 }
 0x2ef   : > { %v2835_v21 = vpop.permute.xlu0 %2834 }
 0x2f0   : > { %v3428_v9 = vpop.permute.xlu1 %3427  ;;  %2852 = vst.msk [vmem:[%s4391_s29 + $0x68] sm:$0x1] %vm1829_vm13, %v2835_v21 }
 0x2f1   : > { %3446 = vst.msk [vmem:[%s4391_s29 + $0x5d] sm:$0x1] %vm1829_vm13, %v3428_v9 }
 0x2f3   : > { %v2954_v24 = vpop.permute.xlu0 %2953 }
 0x2f4   : > { %v1940_v23 = vpop.permute.xlu1 %1939  ;;  %2971 = vst.msk [vmem:[%s4391_s29 + $0x69] sm:$0x1] %vm1829_vm13, %v2954_v24 }
 0x2f5   : > { %1956 = vst.msk [vmem:[%s4391_s29 + $0x71] sm:$0x1] %vm1829_vm13, %v1940_v23 }
 0x2f7   : > { %v3073_v62 = vpop.permute.xlu0 %3072 }
 0x2f8   : > { %v2059_v60 = vpop.permute.xlu1 %2058  ;;  %3090 = vst.msk [vmem:[%s4391_s29 + $0x6a] sm:$0x1] %vm1829_vm13, %v3073_v62 }
 0x2f9   : > { %2075 = vst.msk [vmem:[%s4391_s29 + $0x72] sm:$0x1] %vm1829_vm13, %v2059_v60 }
 0x2fb   : > { %v3192_v3 = vpop.permute.xlu0 %3191 }
 0x2fc   : > { %v2178_v5 = vpop.permute.xlu1 %2177  ;;  %3209 = vst.msk [vmem:[%s4391_s29 + $0x6b] sm:$0x1] %vm1829_vm13, %v3192_v3 }
 0x2fd   : > { %2194 = vst.msk [vmem:[%s4391_s29 + $0x73] sm:$0x1] %vm1829_vm13, %v2178_v5 }
 0x2ff   : > { %v3311_v27 = vpop.permute.xlu0 %3310 }
 0x300   : > { %v2297_v2 = vpop.permute.xlu1 %2296  ;;  %3328 = vst.msk [vmem:[%s4391_s29 + $0x6c] sm:$0x1] %vm1829_vm13, %v3311_v27 }
 0x301   : > { %2313 = vst.msk [vmem:[%s4391_s29 + $0x74] sm:$0x1] %vm1829_vm13, %v2297_v2 }
 0x303   : > { %v3580_v0 = vpop.permute.xlu0 %3579 }
 0x304   : > { %v2416_v26 = vpop.permute.xlu1 %2415  ;;  %v3609_v30 = vsel %vm3607_vm15, %v3580_v0, %v3582_v1 }
 0x305   : > { %2432 = vst.msk [vmem:[%s4391_s29 + $0x75] sm:$0x1] %vm1829_vm13, %v2416_v26  ;;  %3625 = vst.msk [vmem:[%s4391_s29 + $0x1e] sm:$0x1] %vm1829_vm13, %v3609_v30 }
 0x307   : > { %v3584_v31 = vpop.permute.xlu0 %3583 }
 0x308   : > { %v2535_v13 = vpop.permute.xlu1 %2534  ;;  %v3610_v32 = vsel %vm3607_vm15, %v3584_v31, %v3586_v61 }
 0x309   : > { %2551 = vst.msk [vmem:[%s4391_s29 + $0x76] sm:$0x1] %vm1829_vm13, %v2535_v13  ;;  %3626 = vst.msk [vmem:[%s4391_s29 + $0x2e] sm:$0x1] %vm1829_vm13, %v3610_v32 }
 0x30b   : > { %v3596_v7 = vpop.permute.xlu0 %3595 }
 0x30c   : > { %v2693_v16 = vpop.permute.xlu1 %2692  ;;  %v3613_v34 = vsel %vm3607_vm15, %v3596_v7, %v3598_v58 }
 0x30d   : > { %3629 = vst.msk [vmem:[%s4391_s29 + $0x5e] sm:$0x1] %vm1829_vm13, %v3613_v34 }
 0x30f   : > { %v3600_v8 = vpop.permute.xlu0 %3599 }
 0x310   : > { %v2709_v43 = vpop.permute.xlu1 %2708  ;;  %v3614_v48 = vsel %vm3607_vm15, %v3600_v8, %v3602_v15 }
 0x311   : > { %3630 = vst.msk [vmem:[%s4391_s29 + $0x6e] sm:$0x1] %vm1829_vm13, %v3614_v48 }
 0x313   : > { %v3430_v6 = vpop.permute.xlu0 %3429 }
 0x314   : > { %v2837_v50 = vpop.permute.xlu1 %2836  ;;  %3447 = vst.msk [vmem:[%s4391_s29 + $0x6d] sm:$0x1] %vm1829_vm13, %v3430_v6 }
 0x315   : > { %2853 = vst.msk [vmem:[%s4391_s29 + $0x78] sm:$0x1] %vm1829_vm13, %v2837_v50 }
 0x317   : > { %v2691_v42 = vpop.permute.xlu0 %2690 }
 0x318   : > { %v2956_v10 = vpop.permute.xlu1 %2955  ;;  %v2714_v33 = vsel %vm2710_vm14, %v2691_v42, %v2693_v16 }
 0x319   : > { %2972 = vst.msk [vmem:[%s4391_s29 + $0x79] sm:$0x1] %vm1829_vm13, %v2956_v10  ;;  %2730 = vst.msk [vmem:[%s4391_s29 + $0x37] sm:$0x1] %vm1829_vm13, %v2714_v33 }
 0x31b   : > { %v2707_v37 = vpop.permute.xlu0 %2706 }
 0x31c   : > { %v3075_v53 = vpop.permute.xlu1 %3074  ;;  %v2718_v11 = vsel %vm2710_vm14, %v2707_v37, %v2709_v43 }
 0x31d   : > { %3091 = vst.msk [vmem:[%s4391_s29 + $0x7a] sm:$0x1] %vm1829_vm13, %v3075_v53  ;;  %2734 = vst.msk [vmem:[%s4391_s29 + $0x77] sm:$0x1] %vm1829_vm13, %v2718_v11 }
 0x31f   : > { %v3588_v57 = vpop.permute.xlu0 %3587 }
 0x320   : > { %v3194_v54 = vpop.permute.xlu1 %3193 }
 0x321   : > { %3210 = vst.msk [vmem:[%s4391_s29 + $0x7b] sm:$0x1] %vm1829_vm13, %v3194_v54 }
 0x323   : > { %v3604_v51 = vpop.permute.xlu0 %3603 }
 0x324   : > { %v3313_v39 = vpop.permute.xlu1 %3312 }
 0x325   : > { %3329 = vst.msk [vmem:[%s4391_s29 + $0x7c] sm:$0x1] %vm1829_vm13, %v3313_v39 }
 0x327   : > { %v3732_v25 = vpop.permute.xlu0 %3731 }
 0x328   : > { %v3590_v59 = vpop.permute.xlu1 %3589  ;;  %3749 = vst.msk [vmem:[%s4391_s29 + $0x6f] sm:$0x1] %vm1829_vm13, %v3732_v25 }
 0x329   : > { %v3611_v46 = vsel %vm3607_vm15, %v3588_v57, %v3590_v59 }
 0x32a   : > { %3627 = vst.msk [vmem:[%s4391_s29 + $0x3e] sm:$0x1] %vm1829_vm13, %v3611_v46 }
 0x32c   : > { %v3606_v49 = vpop.permute.xlu1 %3605 }
 0x32d   : > { %v3615_v38 = vsel %vm3607_vm15, %v3604_v51, %v3606_v49 }
 0x32e   : > { %3631 = vst.msk [vmem:[%s4391_s29 + $0x7e] sm:$0x1] %vm1829_vm13, %v3615_v38 }
 0x330   : > { %v3432_v63 = vpop.permute.xlu1 %3431 }
 0x331   : > { %3448 = vst.msk [vmem:[%s4391_s29 + $0x7d] sm:$0x1] %vm1829_vm13, %v3432_v63 }
 0x334   : > { %v3734_v52 = vpop.permute.xlu1 %3733 }
 0x335   : > { %3750 = vst.msk [vmem:[%s4391_s29 + $0x7f] sm:$0x1] %vm1829_vm13, %v3734_v52 }
 0x336   : > { %4056 = shalt.err (!%p4053_p5)
}
 0x337   : > { %s4057_s27 = scalar_lea.hbm %s5226_s5, 2048  ;;  %s4061_s19 = scalar_lea.hbm %s5283_s3, 4096 }
 0x338   : > { %p4058_p6 = scmp.ne.s32.totalorder %s5226_s5, %s4057_s27  ;;  %p4062_p10 = scmp.lt.u32.totalorder %s5226_s5, %s5283_s3 }
 0x339   : > { %p4063_p11 = scmp.lt.u32.totalorder %s4061_s19, %s4057_s27  ;;  %p4065_p13 = scmp.lt.u32.totalorder %s4057_s27, %s5226_s5 }
 0x33a   : > { %p4059_p7 = pnand %p4058_p6, %p4211_p4 }
 0x33b   : > { %p4064_p12 = por %p4063_p11, %p4062_p10 }
 0x33c   : > { %p4060_p9 = pneg %p4059_p7 }
 0x33d   : > { %p4066_p0 = por %p4065_p13, %p4064_p12 }
 0x33f   : > { %p4067_p1 = pnand %p4066_p0, %p4060_p9 }
 0x341   : > { %4070 = shalt.err (!%p4067_p1)
}
 0x342   : > { %s4149_s26 = smov 128   ;;  %s4150_s28 = smov 8  }
 0x343   : > { %3960 = dma.vmem_to_hbm [thread:$0]  (%p4211_p4), %s5228_s11, 2048, %s5226_s5, %s5234_s6, %s4149_s26, %s4149_s26, %s4150_s28  }
 0x344 PF: > { %p3966_p2 = scmp.ge.s32.totalorder %s4121_s17, 2  ;;  %s3782_s8 = sand.u32 1, %s4101_s12  }
 0x345   : > { %s3783_s30 = scalar_lea.sflag [#allocation4], %s3782_s8 }
 0x346   : > { %p3963_p3 = pnand %p3966_p2, %p4218_p8 }
 0x348   : > { %4096 = dma.done.wait (!%p3963_p3), %s3783_s30, 2048  }
 0x349   : > { %4098 = vsyncadd (!%p3963_p3), %s3783_s30, 4294965248  ;;  %s16_s17 = sadd.s32 1, %s4121_s17   ;;  %s5289_s12 = smov %s4105_s13 }
 0x34a   : > { %p13_p5 = scmp.ge.s32.totalorder %s16_s17, 4   ;;  %s5290_s13 = smov %s4109_s14 }
 0x34b   : > { %s5291_s14 = smov %s4224_s25  ;;  %s5292_s15 = smov %s4117_s16 }
 0x34c   : > { %s5293_s16 = smov %s5295_s20  ;;  %15 = sbr.rel (!%p13_p5) target bundleno = 4 (0x4), region = 75 }
 0x353   :  { %3788 = vsyncpa [#allocation4], 1 }
 0x354   :  { %3790 = vsyncpa [#allocation4 + $0x1], 1 }

</bundles_post_ra>
